<compile_context>
chip_gen: v5e
topology: v5e:2x2
jax: 0.10.0
libtpu: 0.0.40
codegen_flags: <defaults>
</compile_context>

<pallas_src>
import functools

import numpy as np
import jax
import jax.numpy as jnp
from jax.experimental import pallas as pl
from jax.experimental.pallas import tpu as pltpu

N_SIGMA = 2
FOREGROUND_WEIGHT = 200.0
CLS_RATIO = 1.0

# Conservative for v7x (64 MiB VMEM per TC).  On v5e/v6e (128 MiB VMEM) these can
# be raised to ~(512, 1024) tiles and ~96 MiB without any other change.
VMEM_LIMIT = 48 * 1024 * 1024
TH_TARGET = 256
TW_TARGET = 512


# ---------------------------------------------------------------------------
# helpers
# ---------------------------------------------------------------------------
def _pick_tile(dim, target, quantum):
    """Largest tile <= target that is a multiple of `quantum` and divides `dim`
    (falls back to the full dim, which is always a legal block)."""
    if dim <= target:
        return dim
    t = (target // quantum) * quantum
    while t >= quantum:
        if dim % t == 0:
            return t
        t -= quantum
    # TODO(synk): full-dim fallback can blow VMEM for awkward image sizes; pad instead.
    return dim


def _scal_tile(vals):
    """Pack up to 8 scalars into one (8, 128) tile (row r = vals[r] broadcast)."""
    vals = list(vals) + [0.0] * (8 - len(vals))
    rows = [jnp.full((1, 128), v, jnp.float32) for v in vals]
    return jnp.concatenate(rows, axis=0)


def _unique_ids(inst_flat, K):
    """First K unique nonzero ids (ascending), zero padded.  One device sort."""
    s = jnp.sort(inst_flat.astype(jnp.int32))
    is_new = jnp.concatenate([jnp.ones((1,), jnp.bool_), s[1:] != s[:-1]])
    is_new = jnp.logical_and(is_new, s != 0)
    pos = jnp.cumsum(is_new.astype(jnp.int32)) - 1
    idx = jnp.where(is_new, pos, K)           # out-of-range -> dropped
    return jnp.zeros((K,), jnp.int32).at[idx].set(s, mode="drop")


# ---------------------------------------------------------------------------
# Kernel 1: per-batch elementwise maps + tiled reductions + per-instance sums
# ---------------------------------------------------------------------------
def _batch_kernel(iids_ref, nids_ref, pred_ref, ims_ref, lab_ref, inst_ref,
                  embseed_ref, scal_ref, isum_ref, *, K):
    b = pl.program_id(0)
    ti = pl.program_id(1)
    tj = pl.program_id(2)
    first = jnp.logical_and(ti == 0, tj == 0)

    th = inst_ref.shape[1]
    tw = inst_ref.shape[2]

    inst = inst_ref[0]                       # (th, tw) int32
    lab = lab_ref[0]                         # (th, tw) int32

    # coordinate maps generated in-kernel: linspace(0,2,2048)[:W], linspace(0,1,1024)[:H]
    gy = (jax.lax.broadcasted_iota(jnp.int32, (th, tw), 0) + ti * th).astype(jnp.float32)
    gx = (jax.lax.broadcasted_iota(jnp.int32, (th, tw), 1) + tj * tw).astype(jnp.float32)
    xm = gx * (2.0 / 2047.0)
    ym = gy * (1.0 / 1023.0)

    fg = (inst > 0).astype(jnp.float32)

    # reconstruction MSE numerator (normalized later: sum / (3 * #fg))
    rec = pred_ref[0, 7:10]                  # (3, th, tw)
    rec_sum = jnp.sum(((ims_ref[0] - rec) ** 2) * fg[None, :, :])
    fg_cnt = jnp.sum(fg)

    # cache spatial embedding + seed map once (reused by the per-instance pass)
    seed = jax.nn.sigmoid(pred_ref[0, 4])
    emb_x = jnp.tanh(pred_ref[0, 0]) + xm
    emb_y = jnp.tanh(pred_ref[0, 1]) + ym
    embseed_ref[0, 0] = emb_x
    embseed_ref[0, 1] = emb_y
    embseed_ref[0, 2] = seed

    # background seed loss (label == 0)
    bg = (lab == 0).astype(jnp.float32)
    bg_seed = jnp.sum(bg * seed * seed)

    # 2-class focal loss; logpt = -softplus(-(l_t - l_other))  -> 1 exp + 1 log
    # TODO(synk): FocalOHEMLoss source unavailable; plain focal loss
    # (balance=1, gamma=2, mean over valid pixels) is used as a surrogate.
    valid = (lab < 2).astype(jnp.float32)
    is1 = (lab == 1).astype(jnp.float32)
    delta = (2.0 * is1 - 1.0) * (pred_ref[0, 6] - pred_ref[0, 5])
    e = jnp.exp(-jnp.abs(delta))
    logpt = -(jnp.maximum(-delta, 0.0) + jnp.log1p(e))
    pt = jnp.where(delta >= 0.0, 1.0, e) / (1.0 + e)
    focal = -((1.0 - pt) ** 2) * logpt
    focal_sum = jnp.sum(focal * valid)
    valid_cnt = jnp.sum(valid)

    @pl.when(first)
    def _():
        scal_ref[0] = jnp.zeros((8, 128), jnp.float32)
        isum_ref[0] = jnp.zeros((8, 128), jnp.float32)

    scal_ref[0] = scal_ref[0] + _scal_tile(
        [rec_sum, fg_cnt, bg_seed, focal_sum, valid_cnt])

    # fused per-instance masked sums (old pass 2a) on the already-resident tile.
    # TODO(synk): if this loop becomes VALU-bound, switch to an MXU one-hot
    # contraction (membership (K,P) bf16 @ features (P,6)).
    sig0 = pred_ref[0, 2]
    sig1 = pred_ref[0, 3]
    row_i = jax.lax.broadcasted_iota(jnp.int32, (8, 128), 0)
    col_i = jax.lax.broadcasted_iota(jnp.int32, (8, 128), 1)

    @pl.loop(0, nids_ref[b])                 # only this image's real ids
    def _(k):
        iid = iids_ref[b * K + k]
        m = (inst == iid).astype(jnp.float32)
        cnt = jnp.sum(m)
        sx = jnp.sum(xm * m)
        sy = jnp.sum(ym * m)
        s0 = jnp.sum(sig0 * m)
        s1 = jnp.sum(sig1 * m)
        ssq = jnp.sum((sig0 * sig0 + sig1 * sig1) * m)
        vals = (jnp.where(row_i == 0, cnt, 0.0)
                + jnp.where(row_i == 1, sx, 0.0)
                + jnp.where(row_i == 2, sy, 0.0)
                + jnp.where(row_i == 3, s0, 0.0)
                + jnp.where(row_i == 4, s1, 0.0)
                + jnp.where(row_i == 5, ssq, 0.0))
        isum_ref[0] = isum_ref[0] + jnp.where(col_i == k, vals, 0.0)


# ---------------------------------------------------------------------------
# Kernel 2: per-instance dist / lovasz error + gt maps + seed reductions
# ---------------------------------------------------------------------------
def _inst_kernel(iids_ref, nids_ref, par_ref, embseed_ref, inst_ref,
                 err_ref, gt_ref, scal_ref, *, K):
    b = pl.program_id(0)
    first = jnp.logical_and(pl.program_id(1) == 0, pl.program_id(2) == 0)

    inst = inst_ref[0]                       # (th, tw) int32
    emb_x = embseed_ref[0, 0]
    emb_y = embseed_ref[0, 1]
    seed = embseed_ref[0, 2]

    row_i = jax.lax.broadcasted_iota(jnp.int32, (8, 128), 0)
    col_i = jax.lax.broadcasted_iota(jnp.int32, (8, 128), 1)

    @pl.when(first)
    def _():
        scal_ref[0] = jnp.zeros((8, 128), jnp.float32)

    # deterministic zero fill for padded slots (they are also gated downstream)
    err_ref[...] = jnp.zeros(err_ref.shape, err_ref.dtype)
    gt_ref[...] = jnp.zeros(gt_ref.shape, gt_ref.dtype)

    @pl.loop(0, nids_ref[b])                 # only this image's real ids
    def _(k):
        slot = b * K + k
        iid = iids_ref[slot]
        cx = par_ref[slot * 4 + 0]
        cy = par_ref[slot * 4 + 1]
        s0e = par_ref[slot * 4 + 2]          # exp(10 * mean(sigma0))
        s1e = par_ref[slot * 4 + 3]          # exp(10 * mean(sigma1))
        m = (inst == iid).astype(jnp.float32)
        # TODO(synk): on v6e/v7x the exp could run in bf16 (2x EUP rate) once
        # tolerances are validated; kept f32 here for parity.
        dist = jnp.exp(-((emb_x - cx) ** 2 * s0e + (emb_y - cy) ** 2 * s1e))
        # lovasz-hinge error map: 1 - (2*dist-1)*(2*m-1) == 2*|m - dist|
        err_ref[k] = (2.0 * jnp.abs(m - dist)).astype(err_ref.dtype)
        gt_ref[k] = m.astype(gt_ref.dtype)
        seed_fg = jnp.sum(m * (seed - dist) ** 2)
        scal_ref[0] = scal_ref[0] + jnp.where(
            jnp.logical_and(row_i == 0, col_i == k), seed_fg, 0.0)


# ---------------------------------------------------------------------------
# Forward (fully on device, single jit)
# ---------------------------------------------------------------------------
@functools.partial(jax.jit, static_argnames=("max_instance_num",))
def _forward(prediction, ims, instances, labels, seed_w,
             w_inst, w_var, w_seed, max_instance_num):
    B, C, H, W = prediction.shape
    assert C == 2 + N_SIGMA + 1 + 2 + 3
    K = int(max_instance_num)
    assert 1 <= K <= 128
    th = _pick_tile(H, TH_TARGET, 16)        # 16 matches the bf16 (16,128) tile
    tw = _pick_tile(W, TW_TARGET, 128)
    nth, ntw = H // th, W // tw

    cparams = pltpu.CompilerParams(
        dimension_semantics=("parallel", "arbitrary", "arbitrary"),
        vmem_limit_bytes=VMEM_LIMIT)

    # ---- instance id slots, fully on device (one vmapped sort, no Python loop) ----
    # TODO(synk): PyTorch draws a *random* subset when #ids > max_instance_num;
    # here the K smallest nonzero ids are kept (deterministic).
    iids = jax.vmap(lambda x: _unique_ids(x.reshape(-1), K))(instances)   # (B, K)
    nids = jnp.sum((iids != 0).astype(jnp.int32), axis=-1)                # (B,)
    iids_flat = iids.reshape(-1)

    # ---- pass 1: per-batch maps + tiled reductions + per-instance masked sums ----
    emb_seed, scal1, isum = pl.pallas_call(
        functools.partial(_batch_kernel, K=K),
        out_shape=(jax.ShapeDtypeStruct((B, 3, H, W), jnp.float32),
                   jax.ShapeDtypeStruct((B, 8, 128), jnp.float32),
                   jax.ShapeDtypeStruct((B, 8, 128), jnp.float32)),
        grid_spec=pltpu.PrefetchScalarGridSpec(
            num_scalar_prefetch=2,
            grid=(B, nth, ntw),
            in_specs=[
                pl.BlockSpec((1, C, th, tw), lambda b, i, j, ii, nn: (b, 0, i, j)),
                pl.BlockSpec((1, 3, th, tw), lambda b, i, j, ii, nn: (b, 0, i, j)),
                pl.BlockSpec((1, th, tw), lambda b, i, j, ii, nn: (b, i, j)),
                pl.BlockSpec((1, th, tw), lambda b, i, j, ii, nn: (b, i, j)),
            ],
            out_specs=(
                pl.BlockSpec((1, 3, th, tw), lambda b, i, j, ii, nn: (b, 0, i, j)),
                pl.BlockSpec((1, 8, 128), lambda b, i, j, ii, nn: (b, 0, 0)),
                pl.BlockSpec((1, 8, 128), lambda b, i, j, ii, nn: (b, 0, 0)),
            )),
        compiler_params=cparams,
    )(iids_flat, nids, prediction, ims, labels, instances)

    # per-instance statistics from the fused masked sums
    cnt = isum[:, 0, :K]
    sx = isum[:, 1, :K]
    sy = isum[:, 2, :K]
    S0 = isum[:, 3, :K]
    S1 = isum[:, 4, :K]
    ssq = isum[:, 5, :K]
    cnt_safe = jnp.maximum(cnt, 1.0)
    cx = sx / cnt_safe
    cy = sy / cnt_safe
    s0m = S0 / cnt_safe
    s1m = S1 / cnt_safe
    s0e = jnp.exp(10.0 * s0m)
    s1e = jnp.exp(10.0 * s1m)
    # sum over the mask of (sig - mean)^2, computed algebraically (no sigma in pass 2)
    var_num = ssq - (S0 * S0 + S1 * S1) / cnt_safe
    params = jnp.stack([cx, cy, s0e, s1e], axis=-1).reshape(-1).astype(jnp.float32)

    # ---- pass 2: dist / lovasz-error / gt maps + per-instance seed reductions ----
    err, gt, scal2 = pl.pallas_call(
        functools.partial(_inst_kernel, K=K),
        out_shape=(jax.ShapeDtypeStruct((B, K, H, W), jnp.bfloat16),
                   jax.ShapeDtypeStruct((B, K, H, W), jnp.bfloat16),
                   jax.ShapeDtypeStruct((B, 8, 128), jnp.float32)),
        grid_spec=pltpu.PrefetchScalarGridSpec(
            num_scalar_prefetch=3,
            grid=(B, nth, ntw),
            in_specs=[
                pl.BlockSpec((1, 3, th, tw), lambda b, i, j, ii, nn, pp: (b, 0, i, j)),
                pl.BlockSpec((1, th, tw), lambda b, i, j, ii, nn, pp: (b, i, j)),
            ],
            out_specs=(
                pl.BlockSpec((None, K, th, tw), lambda b, i, j, ii, nn, pp: (b, 0, i, j)),
                pl.BlockSpec((None, K, th, tw), lambda b, i, j, ii, nn, pp: (b, 0, i, j)),
                pl.BlockSpec((1, 8, 128), lambda b, i, j, ii, nn, pp: (b, 0, 0)),
            )),
        compiler_params=cparams,
    )(iids_flat, nids, params, emb_seed, instances)

    # ---- lovasz hinge via one key-value sort (no argsort, no gathers) ----
    # TODO(synk): sort has no TPU-Pallas primitive; jax.lax.sort stays in XLA.
    P = H * W
    neg_sorted, gt_sorted = jax.lax.sort(
        ((-err).reshape(B, K, P), gt.reshape(B, K, P)), dimension=-1, num_keys=1)
    e_sorted = -(neg_sorted.astype(jnp.float32))
    g = gt_sorted.astype(jnp.float32)
    gts = jnp.sum(g, axis=-1, keepdims=True)
    cs = jnp.cumsum(g, axis=-1)
    intersection = gts - cs
    union = gts + (jnp.arange(1, P + 1, dtype=jnp.float32) - cs)
    jaccard = 1.0 - intersection / union
    grad = jnp.concatenate(
        [jaccard[..., :1], jaccard[..., 1:] - jaccard[..., :-1]], axis=-1)
    lov = jnp.sum(jnp.maximum(e_sorted, 0.0) * grad, axis=-1)            # (B, K)

    # ---- final bookkeeping (all (B, K) vectorized, no host round-trips) ----
    seed_fg = scal2[:, 0, :K]
    valid = iids != 0
    validf = valid.astype(jnp.float32)
    obj_b = jnp.sum(validf, axis=-1)
    inst_b = jnp.sum(jnp.where(valid, lov, 0.0), axis=-1)
    var_b = jnp.sum(jnp.where(valid, var_num / (2.0 * cnt_safe), 0.0), axis=-1)
    seedfg_b = jnp.sum(jnp.where(valid, FOREGROUND_WEIGHT * seed_fg, 0.0), axis=-1)

    obj_safe = jnp.maximum(obj_b, 1.0)
    inst_loss_b = jnp.where(obj_b > 0, inst_b / obj_safe, 0.0)
    var_loss_b = jnp.where(obj_b > 0, var_b / obj_safe, 0.0)

    bg_seed_b = scal1[:, 2, 0]
    seed_loss_b = (bg_seed_b + seedfg_b) / float(H * W)

    rec_total = jnp.sum(scal1[:, 0, 0])
    fg_total = jnp.sum(scal1[:, 1, 0])
    res_loss = jnp.where(fg_total > 0,
                         rec_total / (3.0 * jnp.maximum(fg_total, 1.0)), 0.0)

    focal_sum_b = scal1[:, 3, 0]
    valid_cnt_b = scal1[:, 4, 0]
    cls_b = jnp.where(valid_cnt_b > 0,
                      CLS_RATIO * focal_sum_b / jnp.maximum(valid_cnt_b, 1.0) * seed_w,
                      0.0)
    cls_loss = jnp.sum(cls_b)

    loss = jnp.sum((w_inst * inst_loss_b + w_var * var_loss_b
                    + w_seed * seed_loss_b) * seed_w)
    # TODO(synk): the NaN branch that resets `b = 1` in PyTorch is not replicated;
    # the `+ prediction.sum() * 0` term is dropped (value is 0, pure HBM re-read).
    loss = loss / B + cls_loss / B + 0.1 * res_loss
    focal_loss = cls_loss / B
    return loss, focal_loss


def mots_loss_forward(prediction, ims, instances, labels,
                      w_inst=1.0, w_var=10.0, w_seed=1.0, seed_w=None,
                      max_instance_num=25):
    prediction = jnp.asarray(prediction, jnp.float32)
    ims = jnp.asarray(ims, jnp.float32)
    instances = jnp.asarray(instances, jnp.int32)
    labels = jnp.asarray(labels, jnp.int32)
    B = prediction.shape[0]
    if seed_w is None:
        seed_w = jnp.ones((B,), jnp.float32)
    else:
        seed_w = jnp.asarray(seed_w, jnp.float32)
    loss, focal_loss = _forward(prediction, ims, instances, labels, seed_w,
                                jnp.float32(w_inst), jnp.float32(w_var),
                                jnp.float32(w_seed),
                                max_instance_num=max_instance_num)
    iou_meter = []   # iou=False default in the reference forward
    return loss, focal_loss, iou_meter


if __name__ == "__main__":
    B, C, H, W = 2, 10, 16, 16
    key = jax.random.PRNGKey(0)
    k1, k2 = jax.random.split(key)
    prediction = jax.random.normal(k1, (B, C, H, W), jnp.float32) * 0.5
    ims = jax.random.uniform(k2, (B, 3, H, W), jnp.float32)

    inst = np.zeros((B, H, W), np.int32)
    inst[0, 2:6, 2:8] = 1
    inst[0, 9:14, 5:12] = 2
    inst[1, 4:12, 4:12] = 1
    labels = (inst > 0).astype(np.int32)
    labels[0, 0:2, :] = 2   # ignore region for the cls branch

    loss, focal_loss, iou_meter = mots_loss_forward(
        prediction, ims, jnp.asarray(inst), jnp.asarray(labels))
    jax.block_until_ready((loss, focal_loss))
    print("KERNEL_OK")
</pallas_src>

<mosaic_0001>
module attributes {stable_mosaic.version = 11 : i64} {
  func.func @_batch_kernel(%arg0: i32, %arg1: i32, %arg2: i32, %arg3: memref<50xi32, #tpu.memory_space<smem>>, %arg4: memref<2xi32, #tpu.memory_space<smem>>, %arg5: memref<1x10x16x16xf32, #tpu.memory_space<vmem>>, %arg6: memref<1x3x16x16xf32, #tpu.memory_space<vmem>>, %arg7: memref<1x16x16xi32, #tpu.memory_space<vmem>>, %arg8: memref<1x16x16xi32, #tpu.memory_space<vmem>>, %arg9: memref<1x3x16x16xf32, #tpu.memory_space<vmem>>, %arg10: memref<1x8x128xf32, #tpu.memory_space<vmem>>, %arg11: memref<1x8x128xf32, #tpu.memory_space<vmem>>) attributes {dimension_semantics = [#tpu.dimension_semantics<parallel>, #tpu.dimension_semantics<arbitrary>, #tpu.dimension_semantics<arbitrary>], iteration_bounds = array<i64: 2, 1, 1>, scalar_prefetch = 2 : i64, scratch_operands = 0 : i64, tpu.core_type = #tpu.core_type<tc>, window_params = [{transform_indices = @transform_0, window_bounds = array<i64: 1, 10, 16, 16>}, {transform_indices = @transform_1, window_bounds = array<i64: 1, 3, 16, 16>}, {transform_indices = @transform_2, window_bounds = array<i64: 1, 16, 16>}, {transform_indices = @transform_3, window_bounds = array<i64: 1, 16, 16>}, {transform_indices = @transform_4, window_bounds = array<i64: 1, 3, 16, 16>}, {transform_indices = @transform_5, window_bounds = array<i64: 1, 8, 128>}, {transform_indices = @transform_6, window_bounds = array<i64: 1, 8, 128>}]} {
    %c0_i32 = arith.constant 0 : i32
    %0 = arith.cmpi eq, %arg1, %c0_i32 : i32
    %c0_i32_0 = arith.constant 0 : i32
    %1 = arith.cmpi eq, %arg2, %c0_i32_0 : i32
    %2 = arith.andi %0, %1 : i1
    %c0 = arith.constant 0 : index
    %c0_1 = arith.constant 0 : index
    %c0_2 = arith.constant 0 : index
    %3 = vector.load %arg8[%c0, %c0_1, %c0_2] : memref<1x16x16xi32, #tpu.memory_space<vmem>>, vector<1x16x16xi32>
    %4 = vector.shape_cast %3 : vector<1x16x16xi32> to vector<16x16xi32>
    %c0_3 = arith.constant 0 : index
    %c0_4 = arith.constant 0 : index
    %c0_5 = arith.constant 0 : index
    %5 = vector.load %arg7[%c0_3, %c0_4, %c0_5] : memref<1x16x16xi32, #tpu.memory_space<vmem>>, vector<1x16x16xi32>
    %6 = vector.shape_cast %5 : vector<1x16x16xi32> to vector<16x16xi32>
    %7 = tpu.iota {dimensions = array<i32: 0>} : vector<16x16xi32>
    %c16_i32 = arith.constant 16 : i32
    %8 = arith.muli %arg1, %c16_i32 : i32
    %9 = vector.broadcast %8 : i32 to vector<16x16xi32>
    %10 = arith.addi %7, %9 : vector<16x16xi32>
    %11 = arith.sitofp %10 : vector<16x16xi32> to vector<16x16xf32>
    %12 = tpu.iota {dimensions = array<i32: 1>} : vector<16x16xi32>
    %c16_i32_6 = arith.constant 16 : i32
    %13 = arith.muli %arg2, %c16_i32_6 : i32
    %14 = vector.broadcast %13 : i32 to vector<16x16xi32>
    %15 = arith.addi %12, %14 : vector<16x16xi32>
    %16 = arith.sitofp %15 : vector<16x16xi32> to vector<16x16xf32>
    %cst = arith.constant 9.77039569E-4 : f32
    %17 = vector.broadcast %cst : f32 to vector<16x16xf32>
    %18 = arith.mulf %16, %17 : vector<16x16xf32>
    %cst_7 = arith.constant 9.77517105E-4 : f32
    %19 = vector.broadcast %cst_7 : f32 to vector<16x16xf32>
    %20 = arith.mulf %11, %19 : vector<16x16xf32>
    %c0_i32_8 = arith.constant 0 : i32
    %21 = vector.broadcast %c0_i32_8 : i32 to vector<16x16xi32>
    %22 = arith.cmpi sgt, %4, %21 : vector<16x16xi32>
    %23 = arith.extui %22 : vector<16x16xi1> to vector<16x16xi32>
    %24 = arith.sitofp %23 : vector<16x16xi32> to vector<16x16xf32>
    %c0_9 = arith.constant 0 : index
    %c7 = arith.constant 7 : index
    %c0_10 = arith.constant 0 : index
    %c0_11 = arith.constant 0 : index
    %25 = vector.load %arg5[%c0_9, %c7, %c0_10, %c0_11] : memref<1x10x16x16xf32, #tpu.memory_space<vmem>>, vector<1x3x16x16xf32>
    %26 = vector.shape_cast %25 : vector<1x3x16x16xf32> to vector<3x16x16xf32>
    %c0_12 = arith.constant 0 : index
    %c0_13 = arith.constant 0 : index
    %c0_14 = arith.constant 0 : index
    %c0_15 = arith.constant 0 : index
    %27 = vector.load %arg6[%c0_12, %c0_13, %c0_14, %c0_15] : memref<1x3x16x16xf32, #tpu.memory_space<vmem>>, vector<1x3x16x16xf32>
    %28 = vector.shape_cast %27 : vector<1x3x16x16xf32> to vector<3x16x16xf32>
    %29 = arith.subf %28, %26 : vector<3x16x16xf32>
    %30 = arith.mulf %29, %29 : vector<3x16x16xf32>
    %31 = vector.shape_cast %24 : vector<16x16xf32> to vector<1x16x16xf32>
    %32 = vector.broadcast %31 : vector<1x16x16xf32> to vector<3x16x16xf32>
    %33 = arith.mulf %30, %32 : vector<3x16x16xf32>
    %34 = vector.shape_cast %33 : vector<3x16x16xf32> to vector<1x3x16x16xf32>
    %cst_16 = arith.constant dense<0.000000e+00> : vector<1xf32>
    %35 = vector.multi_reduction <add>, %34, %cst_16 [1, 2, 3] : vector<1x3x16x16xf32> to vector<1xf32>
    %36 = vector.shape_cast %35 : vector<1xf32> to vector<1x1x1x1xf32>
    %37 = vector.extract %36[0, 0, 0, 0] : f32 from vector<1x1x1x1xf32>
    %38 = vector.shape_cast %24 : vector<16x16xf32> to vector<1x16x16xf32>
    %cst_17 = arith.constant dense<0.000000e+00> : vector<1xf32>
    %39 = vector.multi_reduction <add>, %38, %cst_17 [1, 2] : vector<1x16x16xf32> to vector<1xf32>
    %40 = vector.shape_cast %39 : vector<1xf32> to vector<1x1x1xf32>
    %41 = vector.extract %40[0, 0, 0] : f32 from vector<1x1x1xf32>
    %c0_18 = arith.constant 0 : index
    %c4 = arith.constant 4 : index
    %c0_19 = arith.constant 0 : index
    %c0_20 = arith.constant 0 : index
    %42 = vector.load %arg5[%c0_18, %c4, %c0_19, %c0_20] : memref<1x10x16x16xf32, #tpu.memory_space<vmem>>, vector<1x1x16x16xf32>
    %43 = vector.shape_cast %42 : vector<1x1x16x16xf32> to vector<16x16xf32>
    %44 = arith.negf %43 : vector<16x16xf32>
    %45 = math.exp %44 : vector<16x16xf32>
    %cst_21 = arith.constant 1.000000e+00 : f32
    %46 = vector.broadcast %cst_21 : f32 to vector<16x16xf32>
    %47 = arith.addf %46, %45 : vector<16x16xf32>
    %48 = arith.divf %46, %47 : vector<16x16xf32>
    %c0_22 = arith.constant 0 : index
    %c0_23 = arith.constant 0 : index
    %c0_24 = arith.constant 0 : index
    %c0_25 = arith.constant 0 : index
    %49 = vector.load %arg5[%c0_22, %c0_23, %c0_24, %c0_25] : memref<1x10x16x16xf32, #tpu.memory_space<vmem>>, vector<1x1x16x16xf32>
    %50 = vector.shape_cast %49 : vector<1x1x16x16xf32> to vector<16x16xf32>
    %51 = math.tanh %50 : vector<16x16xf32>
    %52 = arith.addf %51, %18 : vector<16x16xf32>
    %c0_26 = arith.constant 0 : index
    %c1 = arith.constant 1 : index
    %c0_27 = arith.constant 0 : index
    %c0_28 = arith.constant 0 : index
    %53 = vector.load %arg5[%c0_26, %c1, %c0_27, %c0_28] : memref<1x10x16x16xf32, #tpu.memory_space<vmem>>, vector<1x1x16x16xf32>
    %54 = vector.shape_cast %53 : vector<1x1x16x16xf32> to vector<16x16xf32>
    %55 = math.tanh %54 : vector<16x16xf32>
    %56 = arith.addf %55, %20 : vector<16x16xf32>
    %c0_29 = arith.constant 0 : index
    %c0_30 = arith.constant 0 : index
    %c0_31 = arith.constant 0 : index
    %c0_32 = arith.constant 0 : index
    %57 = vector.load %arg9[%c0_29, %c0_30, %c0_31, %c0_32] : memref<1x3x16x16xf32, #tpu.memory_space<vmem>>, vector<1x1x16x16xf32>
    %58 = vector.shape_cast %57 : vector<1x1x16x16xf32> to vector<16x16xf32>
    %59 = vector.shape_cast %52 : vector<16x16xf32> to vector<1x1x16x16xf32>
    tpu.vector_store %arg9[%c0_29, %c0_30, %c0_31, %c0_32], %59 {strides = array<i32>} : memref<1x3x16x16xf32, #tpu.memory_space<vmem>>, vector<1x1x16x16xf32>,
    %c0_33 = arith.constant 0 : index
    %c1_34 = arith.constant 1 : index
    %c0_35 = arith.constant 0 : index
    %c0_36 = arith.constant 0 : index
    %60 = vector.load %arg9[%c0_33, %c1_34, %c0_35, %c0_36] : memref<1x3x16x16xf32, #tpu.memory_space<vmem>>, vector<1x1x16x16xf32>
    %61 = vector.shape_cast %60 : vector<1x1x16x16xf32> to vector<16x16xf32>
    %62 = vector.shape_cast %56 : vector<16x16xf32> to vector<1x1x16x16xf32>
    tpu.vector_store %arg9[%c0_33, %c1_34, %c0_35, %c0_36], %62 {strides = array<i32>} : memref<1x3x16x16xf32, #tpu.memory_space<vmem>>, vector<1x1x16x16xf32>,
    %c0_37 = arith.constant 0 : index
    %c2 = arith.constant 2 : index
    %c0_38 = arith.constant 0 : index
    %c0_39 = arith.constant 0 : index
    %63 = vector.load %arg9[%c0_37, %c2, %c0_38, %c0_39] : memref<1x3x16x16xf32, #tpu.memory_space<vmem>>, vector<1x1x16x16xf32>
    %64 = vector.shape_cast %63 : vector<1x1x16x16xf32> to vector<16x16xf32>
    %65 = vector.shape_cast %48 : vector<16x16xf32> to vector<1x1x16x16xf32>
    tpu.vector_store %arg9[%c0_37, %c2, %c0_38, %c0_39], %65 {strides = array<i32>} : memref<1x3x16x16xf32, #tpu.memory_space<vmem>>, vector<1x1x16x16xf32>,
    %c0_i32_40 = arith.constant 0 : i32
    %66 = vector.broadcast %c0_i32_40 : i32 to vector<16x16xi32>
    %67 = arith.cmpi eq, %6, %66 : vector<16x16xi32>
    %68 = arith.extui %67 : vector<16x16xi1> to vector<16x16xi32>
    %69 = arith.sitofp %68 : vector<16x16xi32> to vector<16x16xf32>
    %70 = arith.mulf %69, %48 : vector<16x16xf32>
    %71 = arith.mulf %70, %48 : vector<16x16xf32>
    %72 = vector.shape_cast %71 : vector<16x16xf32> to vector<1x16x16xf32>
    %cst_41 = arith.constant dense<0.000000e+00> : vector<1xf32>
    %73 = vector.multi_reduction <add>, %72, %cst_41 [1, 2] : vector<1x16x16xf32> to vector<1xf32>
    %74 = vector.shape_cast %73 : vector<1xf32> to vector<1x1x1xf32>
    %75 = vector.extract %74[0, 0, 0] : f32 from vector<1x1x1xf32>
    %c2_i32 = arith.constant 2 : i32
    %76 = vector.broadcast %c2_i32 : i32 to vector<16x16xi32>
    %77 = arith.cmpi slt, %6, %76 : vector<16x16xi32>
    %78 = arith.extui %77 : vector<16x16xi1> to vector<16x16xi32>
    %79 = arith.sitofp %78 : vector<16x16xi32> to vector<16x16xf32>
    %c1_i32 = arith.constant 1 : i32
    %80 = vector.broadcast %c1_i32 : i32 to vector<16x16xi32>
    %81 = arith.cmpi eq, %6, %80 : vector<16x16xi32>
    %82 = arith.extui %81 : vector<16x16xi1> to vector<16x16xi32>
    %83 = arith.sitofp %82 : vector<16x16xi32> to vector<16x16xf32>
    %cst_42 = arith.constant 2.000000e+00 : f32
    %84 = vector.broadcast %cst_42 : f32 to vector<16x16xf32>
    %85 = arith.mulf %84, %83 : vector<16x16xf32>
    %cst_43 = arith.constant 1.000000e+00 : f32
    %86 = vector.broadcast %cst_43 : f32 to vector<16x16xf32>
    %87 = arith.subf %85, %86 : vector<16x16xf32>
    %c0_44 = arith.constant 0 : index
    %c6 = arith.constant 6 : index
    %c0_45 = arith.constant 0 : index
    %c0_46 = arith.constant 0 : index
    %88 = vector.load %arg5[%c0_44, %c6, %c0_45, %c0_46] : memref<1x10x16x16xf32, #tpu.memory_space<vmem>>, vector<1x1x16x16xf32>
    %89 = vector.shape_cast %88 : vector<1x1x16x16xf32> to vector<16x16xf32>
    %c0_47 = arith.constant 0 : index
    %c5 = arith.constant 5 : index
    %c0_48 = arith.constant 0 : index
    %c0_49 = arith.constant 0 : index
    %90 = vector.load %arg5[%c0_47, %c5, %c0_48, %c0_49] : memref<1x10x16x16xf32, #tpu.memory_space<vmem>>, vector<1x1x16x16xf32>
    %91 = vector.shape_cast %90 : vector<1x1x16x16xf32> to vector<16x16xf32>
    %92 = arith.subf %89, %91 : vector<16x16xf32>
    %93 = arith.mulf %87, %92 : vector<16x16xf32>
    %94 = math.absf %93 : vector<16x16xf32>
    %cst_50 = arith.constant 0.000000e+00 : f32
    %95 = vector.broadcast %cst_50 : f32 to vector<16x16xf32>
    %96 = arith.subf %95, %94 : vector<16x16xf32>
    %97 = math.exp %96 : vector<16x16xf32>
    %cst_51 = arith.constant 0.000000e+00 : f32
    %98 = vector.broadcast %cst_51 : f32 to vector<16x16xf32>
    %99 = arith.subf %98, %93 : vector<16x16xf32>
    %cst_52 = arith.constant 0.000000e+00 : f32
    %100 = vector.broadcast %cst_52 : f32 to vector<16x16xf32>
    %101 = arith.maximumf %99, %100 : vector<16x16xf32>
    %102 = math.log1p %97 : vector<16x16xf32>
    %103 = arith.addf %101, %102 : vector<16x16xf32>
    %cst_53 = arith.constant 0.000000e+00 : f32
    %104 = vector.broadcast %cst_53 : f32 to vector<16x16xf32>
    %105 = arith.subf %104, %103 : vector<16x16xf32>
    %cst_54 = arith.constant 0.000000e+00 : f32
    %106 = vector.broadcast %cst_54 : f32 to vector<16x16xf32>
    %107 = arith.cmpf oge, %93, %106 : vector<16x16xf32>
    %cst_55 = arith.constant 1.000000e+00 : f32
    %108 = vector.broadcast %cst_55 : f32 to vector<16x16xf32>
    %109 = arith.select %107, %108, %97 : vector<16x16xi1>, vector<16x16xf32>
    %cst_56 = arith.constant 1.000000e+00 : f32
    %110 = vector.broadcast %cst_56 : f32 to vector<16x16xf32>
    %111 = arith.addf %110, %97 : vector<16x16xf32>
    %112 = arith.divf %109, %111 : vector<16x16xf32>
    %cst_57 = arith.constant 1.000000e+00 : f32
    %113 = vector.broadcast %cst_57 : f32 to vector<16x16xf32>
    %114 = arith.subf %113, %112 : vector<16x16xf32>
    %115 = arith.mulf %114, %114 : vector<16x16xf32>
    %cst_58 = arith.constant 0.000000e+00 : f32
    %116 = vector.broadcast %cst_58 : f32 to vector<16x16xf32>
    %117 = arith.subf %116, %115 : vector<16x16xf32>
    %118 = arith.mulf %117, %105 : vector<16x16xf32>
    %119 = arith.mulf %118, %79 : vector<16x16xf32>
    %120 = vector.shape_cast %119 : vector<16x16xf32> to vector<1x16x16xf32>
    %cst_59 = arith.constant dense<0.000000e+00> : vector<1xf32>
    %121 = vector.multi_reduction <add>, %120, %cst_59 [1, 2] : vector<1x16x16xf32> to vector<1xf32>
    %122 = vector.shape_cast %121 : vector<1xf32> to vector<1x1x1xf32>
    %123 = vector.extract %122[0, 0, 0] : f32 from vector<1x1x1xf32>
    %124 = vector.shape_cast %79 : vector<16x16xf32> to vector<1x16x16xf32>
    %cst_60 = arith.constant dense<0.000000e+00> : vector<1xf32>
    %125 = vector.multi_reduction <add>, %124, %cst_60 [1, 2] : vector<1x16x16xf32> to vector<1xf32>
    %126 = vector.shape_cast %125 : vector<1xf32> to vector<1x1x1xf32>
    %127 = vector.extract %126[0, 0, 0] : f32 from vector<1x1x1xf32>
    %128 = arith.extui %2 : i1 to i32
    %c0_i32_61 = arith.constant 0 : i32
    %129 = arith.cmpi ne, %128, %c0_i32_61 : i32
    scf.if %129 {
      %cst_86 = arith.constant 0.000000e+00 : f32
      %159 = vector.broadcast %cst_86 : f32 to vector<8x128xf32>
      %c0_87 = arith.constant 0 : index
      %c0_88 = arith.constant 0 : index
      %c0_89 = arith.constant 0 : index
      %160 = vector.load %arg10[%c0_87, %c0_88, %c0_89] : memref<1x8x128xf32, #tpu.memory_space<vmem>>, vector<1x8x128xf32>
      %161 = vector.shape_cast %160 : vector<1x8x128xf32> to vector<8x128xf32>
      %162 = vector.shape_cast %159 : vector<8x128xf32> to vector<1x8x128xf32>
      tpu.vector_store %arg10[%c0_87, %c0_88, %c0_89], %162 {strides = array<i32>} : memref<1x8x128xf32, #tpu.memory_space<vmem>>, vector<1x8x128xf32>,
      %cst_90 = arith.constant 0.000000e+00 : f32
      %163 = vector.broadcast %cst_90 : f32 to vector<8x128xf32>
      %c0_91 = arith.constant 0 : index
      %c0_92 = arith.constant 0 : index
      %c0_93 = arith.constant 0 : index
      %164 = vector.load %arg11[%c0_91, %c0_92, %c0_93] : memref<1x8x128xf32, #tpu.memory_space<vmem>>, vector<1x8x128xf32>
      %165 = vector.shape_cast %164 : vector<1x8x128xf32> to vector<8x128xf32>
      %166 = vector.shape_cast %163 : vector<8x128xf32> to vector<1x8x128xf32>
      tpu.vector_store %arg11[%c0_91, %c0_92, %c0_93], %166 {strides = array<i32>} : memref<1x8x128xf32, #tpu.memory_space<vmem>>, vector<1x8x128xf32>,
    } else {
    }
    %c0_62 = arith.constant 0 : index
    %c0_63 = arith.constant 0 : index
    %c0_64 = arith.constant 0 : index
    %130 = vector.load %arg10[%c0_62, %c0_63, %c0_64] : memref<1x8x128xf32, #tpu.memory_space<vmem>>, vector<1x8x128xf32>
    %131 = vector.shape_cast %130 : vector<1x8x128xf32> to vector<8x128xf32>
    %132 = vector.broadcast %37 : f32 to vector<1x128xf32>
    %133 = vector.broadcast %41 : f32 to vector<1x128xf32>
    %134 = vector.broadcast %75 : f32 to vector<1x128xf32>
    %135 = vector.broadcast %123 : f32 to vector<1x128xf32>
    %136 = vector.broadcast %127 : f32 to vector<1x128xf32>
    %cst_65 = arith.constant 0.000000e+00 : f32
    %137 = vector.broadcast %cst_65 : f32 to vector<1x128xf32>
    %cst_66 = arith.constant 0.000000e+00 : f32
    %138 = vector.broadcast %cst_66 : f32 to vector<1x128xf32>
    %cst_67 = arith.constant 0.000000e+00 : f32
    %139 = vector.broadcast %cst_67 : f32 to vector<1x128xf32>
    %140 = tpu.concatenate %132, %133, %134, %135, %136, %137, %138, %139 in 0 : vector<1x128xf32>, vector<1x128xf32>, vector<1x128xf32>, vector<1x128xf32>, vector<1x128xf32>, vector<1x128xf32>, vector<1x128xf32>, vector<1x128xf32> -> vector<8x128xf32>
    %141 = arith.addf %131, %140 : vector<8x128xf32>
    %c0_68 = arith.constant 0 : index
    %c0_69 = arith.constant 0 : index
    %c0_70 = arith.constant 0 : index
    %142 = vector.load %arg10[%c0_68, %c0_69, %c0_70] : memref<1x8x128xf32, #tpu.memory_space<vmem>>, vector<1x8x128xf32>
    %143 = vector.shape_cast %142 : vector<1x8x128xf32> to vector<8x128xf32>
    %144 = vector.shape_cast %141 : vector<8x128xf32> to vector<1x8x128xf32>
    tpu.vector_store %arg10[%c0_68, %c0_69, %c0_70], %144 {strides = array<i32>} : memref<1x8x128xf32, #tpu.memory_space<vmem>>, vector<1x8x128xf32>,
    %c0_71 = arith.constant 0 : index
    %c2_72 = arith.constant 2 : index
    %c0_73 = arith.constant 0 : index
    %c0_74 = arith.constant 0 : index
    %145 = vector.load %arg5[%c0_71, %c2_72, %c0_73, %c0_74] : memref<1x10x16x16xf32, #tpu.memory_space<vmem>>, vector<1x1x16x16xf32>
    %146 = vector.shape_cast %145 : vector<1x1x16x16xf32> to vector<16x16xf32>
    %c0_75 = arith.constant 0 : index
    %c3 = arith.constant 3 : index
    %c0_76 = arith.constant 0 : index
    %c0_77 = arith.constant 0 : index
    %147 = vector.load %arg5[%c0_75, %c3, %c0_76, %c0_77] : memref<1x10x16x16xf32, #tpu.memory_space<vmem>>, vector<1x1x16x16xf32>
    %148 = vector.shape_cast %147 : vector<1x1x16x16xf32> to vector<16x16xf32>
    %149 = tpu.iota {dimensions = array<i32: 0>} : vector<8x128xi32>
    %150 = tpu.iota {dimensions = array<i32: 1>} : vector<8x128xi32>
    %151 = arith.index_cast %arg0 : i32 to index
    %152 = memref.load %arg4[%151] : memref<2xi32, #tpu.memory_space<smem>>
    %c0_i32_78 = arith.constant 0 : i32
    %153 = arith.subi %152, %c0_i32_78 : i32
    %c1_i32_79 = arith.constant 1 : i32
    %c1_i32_80 = arith.constant 1 : i32
    %154 = arith.subi %c1_i32_79, %c1_i32_80 : i32
    %155 = arith.addi %153, %154 : i32
    %c1_i32_81 = arith.constant 1 : i32
    %156 = arith.divsi %155, %c1_i32_81 : i32
    %c1_i32_82 = arith.constant 1 : i32
    %c0_i32_83 = arith.constant 0 : i32
    %c0_i32_84 = arith.constant 0 : i32
    %157 = arith.subi %156, %c0_i32_84 : i32
    %158 = arith.addi %c0_i32_84, %157 : i32
    %c1_i32_85 = arith.constant 1 : i32
    scf.for %arg12 = %c0_i32_84 to %158 step %c1_i32_85  : i32 {
      %159 = arith.muli %arg12, %c1_i32_82 : i32
      %160 = arith.addi %c0_i32_83, %159 : i32
      %c25_i32 = arith.constant 25 : i32
      %161 = arith.muli %arg0, %c25_i32 : i32
      %162 = arith.addi %161, %160 : i32
      %163 = arith.index_cast %162 : i32 to index
      %164 = memref.load %arg3[%163] : memref<50xi32, #tpu.memory_space<smem>>
      %165 = vector.broadcast %164 : i32 to vector<16x16xi32>
      %166 = arith.cmpi eq, %4, %165 : vector<16x16xi32>
      %167 = arith.extui %166 : vector<16x16xi1> to vector<16x16xi32>
      %168 = arith.sitofp %167 : vector<16x16xi32> to vector<16x16xf32>
      %169 = vector.shape_cast %168 : vector<16x16xf32> to vector<1x16x16xf32>
      %cst_86 = arith.constant dense<0.000000e+00> : vector<1xf32>
      %170 = vector.multi_reduction <add>, %169, %cst_86 [1, 2] : vector<1x16x16xf32> to vector<1xf32>
      %171 = vector.shape_cast %170 : vector<1xf32> to vector<1x1x1xf32>
      %172 = vector.extract %171[0, 0, 0] : f32 from vector<1x1x1xf32>
      %173 = arith.mulf %18, %168 : vector<16x16xf32>
      %174 = vector.shape_cast %173 : vector<16x16xf32> to vector<1x16x16xf32>
      %cst_87 = arith.constant dense<0.000000e+00> : vector<1xf32>
      %175 = vector.multi_reduction <add>, %174, %cst_87 [1, 2] : vector<1x16x16xf32> to vector<1xf32>
      %176 = vector.shape_cast %175 : vector<1xf32> to vector<1x1x1xf32>
      %177 = vector.extract %176[0, 0, 0] : f32 from vector<1x1x1xf32>
      %178 = arith.mulf %20, %168 : vector<16x16xf32>
      %179 = vector.shape_cast %178 : vector<16x16xf32> to vector<1x16x16xf32>
      %cst_88 = arith.constant dense<0.000000e+00> : vector<1xf32>
      %180 = vector.multi_reduction <add>, %179, %cst_88 [1, 2] : vector<1x16x16xf32> to vector<1xf32>
      %181 = vector.shape_cast %180 : vector<1xf32> to vector<1x1x1xf32>
      %182 = vector.extract %181[0, 0, 0] : f32 from vector<1x1x1xf32>
      %183 = arith.mulf %146, %168 : vector<16x16xf32>
      %184 = vector.shape_cast %183 : vector<16x16xf32> to vector<1x16x16xf32>
      %cst_89 = arith.constant dense<0.000000e+00> : vector<1xf32>
      %185 = vector.multi_reduction <add>, %184, %cst_89 [1, 2] : vector<1x16x16xf32> to vector<1xf32>
      %186 = vector.shape_cast %185 : vector<1xf32> to vector<1x1x1xf32>
      %187 = vector.extract %186[0, 0, 0] : f32 from vector<1x1x1xf32>
      %188 = arith.mulf %148, %168 : vector<16x16xf32>
      %189 = vector.shape_cast %188 : vector<16x16xf32> to vector<1x16x16xf32>
      %cst_90 = arith.constant dense<0.000000e+00> : vector<1xf32>
      %190 = vector.multi_reduction <add>, %189, %cst_90 [1, 2] : vector<1x16x16xf32> to vector<1xf32>
      %191 = vector.shape_cast %190 : vector<1xf32> to vector<1x1x1xf32>
      %192 = vector.extract %191[0, 0, 0] : f32 from vector<1x1x1xf32>
      %193 = arith.mulf %146, %146 : vector<16x16xf32>
      %194 = arith.mulf %148, %148 : vector<16x16xf32>
      %195 = arith.addf %193, %194 : vector<16x16xf32>
      %196 = arith.mulf %195, %168 : vector<16x16xf32>
      %197 = vector.shape_cast %196 : vector<16x16xf32> to vector<1x16x16xf32>
      %cst_91 = arith.constant dense<0.000000e+00> : vector<1xf32>
      %198 = vector.multi_reduction <add>, %197, %cst_91 [1, 2] : vector<1x16x16xf32> to vector<1xf32>
      %199 = vector.shape_cast %198 : vector<1xf32> to vector<1x1x1xf32>
      %200 = vector.extract %199[0, 0, 0] : f32 from vector<1x1x1xf32>
      %c0_i32_92 = arith.constant 0 : i32
      %201 = vector.broadcast %c0_i32_92 : i32 to vector<8x128xi32>
      %202 = arith.cmpi eq, %149, %201 : vector<8x128xi32>
      %cst_93 = arith.constant 0.000000e+00 : f32
      %203 = vector.broadcast %172 : f32 to vector<8x128xf32>
      %204 = vector.broadcast %cst_93 : f32 to vector<8x128xf32>
      %205 = arith.select %202, %203, %204 : vector<8x128xi1>, vector<8x128xf32>
      %c1_i32_94 = arith.constant 1 : i32
      %206 = vector.broadcast %c1_i32_94 : i32 to vector<8x128xi32>
      %207 = arith.cmpi eq, %149, %206 : vector<8x128xi32>
      %cst_95 = arith.constant 0.000000e+00 : f32
      %208 = vector.broadcast %177 : f32 to vector<8x128xf32>
      %209 = vector.broadcast %cst_95 : f32 to vector<8x128xf32>
      %210 = arith.select %207, %208, %209 : vector<8x128xi1>, vector<8x128xf32>
      %211 = arith.addf %205, %210 : vector<8x128xf32>
      %c2_i32_96 = arith.constant 2 : i32
      %212 = vector.broadcast %c2_i32_96 : i32 to vector<8x128xi32>
      %213 = arith.cmpi eq, %149, %212 : vector<8x128xi32>
      %cst_97 = arith.constant 0.000000e+00 : f32
      %214 = vector.broadcast %182 : f32 to vector<8x128xf32>
      %215 = vector.broadcast %cst_97 : f32 to vector<8x128xf32>
      %216 = arith.select %213, %214, %215 : vector<8x128xi1>, vector<8x128xf32>
      %217 = arith.addf %211, %216 : vector<8x128xf32>
      %c3_i32 = arith.constant 3 : i32
      %218 = vector.broadcast %c3_i32 : i32 to vector<8x128xi32>
      %219 = arith.cmpi eq, %149, %218 : vector<8x128xi32>
      %cst_98 = arith.constant 0.000000e+00 : f32
      %220 = vector.broadcast %187 : f32 to vector<8x128xf32>
      %221 = vector.broadcast %cst_98 : f32 to vector<8x128xf32>
      %222 = arith.select %219, %220, %221 : vector<8x128xi1>, vector<8x128xf32>
      %223 = arith.addf %217, %222 : vector<8x128xf32>
      %c4_i32 = arith.constant 4 : i32
      %224 = vector.broadcast %c4_i32 : i32 to vector<8x128xi32>
      %225 = arith.cmpi eq, %149, %224 : vector<8x128xi32>
      %cst_99 = arith.constant 0.000000e+00 : f32
      %226 = vector.broadcast %192 : f32 to vector<8x128xf32>
      %227 = vector.broadcast %cst_99 : f32 to vector<8x128xf32>
      %228 = arith.select %225, %226, %227 : vector<8x128xi1>, vector<8x128xf32>
      %229 = arith.addf %223, %228 : vector<8x128xf32>
      %c5_i32 = arith.constant 5 : i32
      %230 = vector.broadcast %c5_i32 : i32 to vector<8x128xi32>
      %231 = arith.cmpi eq, %149, %230 : vector<8x128xi32>
      %cst_100 = arith.constant 0.000000e+00 : f32
      %232 = vector.broadcast %200 : f32 to vector<8x128xf32>
      %233 = vector.broadcast %cst_100 : f32 to vector<8x128xf32>
      %234 = arith.select %231, %232, %233 : vector<8x128xi1>, vector<8x128xf32>
      %235 = arith.addf %229, %234 : vector<8x128xf32>
      %c0_101 = arith.constant 0 : index
      %c0_102 = arith.constant 0 : index
      %c0_103 = arith.constant 0 : index
      %236 = vector.load %arg11[%c0_101, %c0_102, %c0_103] : memref<1x8x128xf32, #tpu.memory_space<vmem>>, vector<1x8x128xf32>
      %237 = vector.shape_cast %236 : vector<1x8x128xf32> to vector<8x128xf32>
      %238 = vector.broadcast %160 : i32 to vector<8x128xi32>
      %239 = arith.cmpi eq, %150, %238 : vector<8x128xi32>
      %cst_104 = arith.constant 0.000000e+00 : f32
      %240 = vector.broadcast %cst_104 : f32 to vector<8x128xf32>
      %241 = arith.select %239, %235, %240 : vector<8x128xi1>, vector<8x128xf32>
      %242 = arith.addf %237, %241 : vector<8x128xf32>
      %c0_105 = arith.constant 0 : index
      %c0_106 = arith.constant 0 : index
      %c0_107 = arith.constant 0 : index
      %243 = vector.load %arg11[%c0_105, %c0_106, %c0_107] : memref<1x8x128xf32, #tpu.memory_space<vmem>>, vector<1x8x128xf32>
      %244 = vector.shape_cast %243 : vector<1x8x128xf32> to vector<8x128xf32>
      %245 = vector.shape_cast %242 : vector<8x128xf32> to vector<1x8x128xf32>
      tpu.vector_store %arg11[%c0_105, %c0_106, %c0_107], %245 {strides = array<i32>} : memref<1x8x128xf32, #tpu.memory_space<vmem>>, vector<1x8x128xf32>,
    }
    return
  }
  func.func @transform_0(%arg0: i32, %arg1: i32, %arg2: i32, %arg3: memref<50xi32, #tpu.memory_space<smem>>, %arg4: memref<2xi32, #tpu.memory_space<smem>>) -> (i32, i32, i32, i32) {
    %c0_i32 = arith.constant 0 : i32
    %c0_i32_0 = arith.constant 0 : i32
    return %arg0, %c0_i32, %arg1, %arg2 : i32, i32, i32, i32
  }
  func.func @transform_1(%arg0: i32, %arg1: i32, %arg2: i32, %arg3: memref<50xi32, #tpu.memory_space<smem>>, %arg4: memref<2xi32, #tpu.memory_space<smem>>) -> (i32, i32, i32, i32) {
    %c0_i32 = arith.constant 0 : i32
    %c0_i32_0 = arith.constant 0 : i32
    return %arg0, %c0_i32, %arg1, %arg2 : i32, i32, i32, i32
  }
  func.func @transform_2(%arg0: i32, %arg1: i32, %arg2: i32, %arg3: memref<50xi32, #tpu.memory_space<smem>>, %arg4: memref<2xi32, #tpu.memory_space<smem>>) -> (i32, i32, i32) {
    %c0_i32 = arith.constant 0 : i32
    return %arg0, %arg1, %arg2 : i32, i32, i32
  }
  func.func @transform_3(%arg0: i32, %arg1: i32, %arg2: i32, %arg3: memref<50xi32, #tpu.memory_space<smem>>, %arg4: memref<2xi32, #tpu.memory_space<smem>>) -> (i32, i32, i32) {
    %c0_i32 = arith.constant 0 : i32
    return %arg0, %arg1, %arg2 : i32, i32, i32
  }
  func.func @transform_4(%arg0: i32, %arg1: i32, %arg2: i32, %arg3: memref<50xi32, #tpu.memory_space<smem>>, %arg4: memref<2xi32, #tpu.memory_space<smem>>) -> (i32, i32, i32, i32) {
    %c0_i32 = arith.constant 0 : i32
    %c0_i32_0 = arith.constant 0 : i32
    return %arg0, %c0_i32, %arg1, %arg2 : i32, i32, i32, i32
  }
  func.func @transform_5(%arg0: i32, %arg1: i32, %arg2: i32, %arg3: memref<50xi32, #tpu.memory_space<smem>>, %arg4: memref<2xi32, #tpu.memory_space<smem>>) -> (i32, i32, i32) {
    %c0_i32 = arith.constant 0 : i32
    %c0_i32_0 = arith.constant 0 : i32
    %c0_i32_1 = arith.constant 0 : i32
    return %arg0, %c0_i32, %c0_i32_0 : i32, i32, i32
  }
  func.func @transform_6(%arg0: i32, %arg1: i32, %arg2: i32, %arg3: memref<50xi32, #tpu.memory_space<smem>>, %arg4: memref<2xi32, #tpu.memory_space<smem>>) -> (i32, i32, i32) {
    %c0_i32 = arith.constant 0 : i32
    %c0_i32_0 = arith.constant 0 : i32
    %c0_i32_1 = arith.constant 0 : i32
    return %arg0, %c0_i32, %c0_i32_0 : i32, i32, i32
  }
}

module attributes {stable_mosaic.version = 11 : i64} {
  func.func @_inst_kernel(%arg0: i32, %arg1: i32, %arg2: i32, %arg3: memref<50xi32, #tpu.memory_space<smem>>, %arg4: memref<2xi32, #tpu.memory_space<smem>>, %arg5: memref<200xf32, #tpu.memory_space<smem>>, %arg6: memref<1x3x16x16xf32, #tpu.memory_space<vmem>>, %arg7: memref<1x16x16xi32, #tpu.memory_space<vmem>>, %arg8: memref<1x25x16x16xbf16, #tpu.memory_space<vmem>>, %arg9: memref<1x25x16x16xbf16, #tpu.memory_space<vmem>>, %arg10: memref<1x8x128xf32, #tpu.memory_space<vmem>>) attributes {dimension_semantics = [#tpu.dimension_semantics<parallel>, #tpu.dimension_semantics<arbitrary>, #tpu.dimension_semantics<arbitrary>], iteration_bounds = array<i64: 2, 1, 1>, scalar_prefetch = 3 : i64, scratch_operands = 0 : i64, tpu.core_type = #tpu.core_type<tc>, window_params = [{transform_indices = @transform_0, window_bounds = array<i64: 1, 3, 16, 16>}, {transform_indices = @transform_1, window_bounds = array<i64: 1, 16, 16>}, {transform_indices = @transform_2, window_bounds = array<i64: 1, 25, 16, 16>}, {transform_indices = @transform_3, window_bounds = array<i64: 1, 25, 16, 16>}, {transform_indices = @transform_4, window_bounds = array<i64: 1, 8, 128>}]} {
    %c0_i32 = arith.constant 0 : i32
    %0 = arith.cmpi eq, %arg1, %c0_i32 : i32
    %c0_i32_0 = arith.constant 0 : i32
    %1 = arith.cmpi eq, %arg2, %c0_i32_0 : i32
    %2 = arith.andi %0, %1 : i1
    %c0 = arith.constant 0 : index
    %c0_1 = arith.constant 0 : index
    %c0_2 = arith.constant 0 : index
    %3 = vector.load %arg7[%c0, %c0_1, %c0_2] : memref<1x16x16xi32, #tpu.memory_space<vmem>>, vector<1x16x16xi32>
    %4 = vector.shape_cast %3 : vector<1x16x16xi32> to vector<16x16xi32>
    %c0_3 = arith.constant 0 : index
    %c0_4 = arith.constant 0 : index
    %c0_5 = arith.constant 0 : index
    %c0_6 = arith.constant 0 : index
    %5 = vector.load %arg6[%c0_3, %c0_4, %c0_5, %c0_6] : memref<1x3x16x16xf32, #tpu.memory_space<vmem>>, vector<1x1x16x16xf32>
    %6 = vector.shape_cast %5 : vector<1x1x16x16xf32> to vector<16x16xf32>
    %c0_7 = arith.constant 0 : index
    %c1 = arith.constant 1 : index
    %c0_8 = arith.constant 0 : index
    %c0_9 = arith.constant 0 : index
    %7 = vector.load %arg6[%c0_7, %c1, %c0_8, %c0_9] : memref<1x3x16x16xf32, #tpu.memory_space<vmem>>, vector<1x1x16x16xf32>
    %8 = vector.shape_cast %7 : vector<1x1x16x16xf32> to vector<16x16xf32>
    %c0_10 = arith.constant 0 : index
    %c2 = arith.constant 2 : index
    %c0_11 = arith.constant 0 : index
    %c0_12 = arith.constant 0 : index
    %9 = vector.load %arg6[%c0_10, %c2, %c0_11, %c0_12] : memref<1x3x16x16xf32, #tpu.memory_space<vmem>>, vector<1x1x16x16xf32>
    %10 = vector.shape_cast %9 : vector<1x1x16x16xf32> to vector<16x16xf32>
    %11 = tpu.iota {dimensions = array<i32: 0>} : vector<8x128xi32>
    %12 = tpu.iota {dimensions = array<i32: 1>} : vector<8x128xi32>
    %13 = arith.extui %2 : i1 to i32
    %c0_i32_13 = arith.constant 0 : i32
    %14 = arith.cmpi ne, %13, %c0_i32_13 : i32
    scf.if %14 {
      %cst_30 = arith.constant 0.000000e+00 : f32
      %31 = vector.broadcast %cst_30 : f32 to vector<8x128xf32>
      %c0_31 = arith.constant 0 : index
      %c0_32 = arith.constant 0 : index
      %c0_33 = arith.constant 0 : index
      %32 = vector.load %arg10[%c0_31, %c0_32, %c0_33] : memref<1x8x128xf32, #tpu.memory_space<vmem>>, vector<1x8x128xf32>
      %33 = vector.shape_cast %32 : vector<1x8x128xf32> to vector<8x128xf32>
      %34 = vector.shape_cast %31 : vector<8x128xf32> to vector<1x8x128xf32>
      tpu.vector_store %arg10[%c0_31, %c0_32, %c0_33], %34 {strides = array<i32>} : memref<1x8x128xf32, #tpu.memory_space<vmem>>, vector<1x8x128xf32>,
    } else {
    }
    %cst = arith.constant 0.000000e+00 : bf16
    %15 = vector.broadcast %cst : bf16 to vector<25x16x16xbf16>
    %c0_14 = arith.constant 0 : index
    %c0_15 = arith.constant 0 : index
    %c0_16 = arith.constant 0 : index
    %c0_17 = arith.constant 0 : index
    %16 = vector.load %arg8[%c0_14, %c0_15, %c0_16, %c0_17] : memref<1x25x16x16xbf16, #tpu.memory_space<vmem>>, vector<1x25x16x16xbf16>
    %17 = vector.shape_cast %16 : vector<1x25x16x16xbf16> to vector<25x16x16xbf16>
    %18 = vector.shape_cast %15 : vector<25x16x16xbf16> to vector<1x25x16x16xbf16>
    tpu.vector_store %arg8[%c0_14, %c0_15, %c0_16, %c0_17], %18 {strides = array<i32>} : memref<1x25x16x16xbf16, #tpu.memory_space<vmem>>, vector<1x25x16x16xbf16>,
    %cst_18 = arith.constant 0.000000e+00 : bf16
    %19 = vector.broadcast %cst_18 : bf16 to vector<25x16x16xbf16>
    %c0_19 = arith.constant 0 : index
    %c0_20 = arith.constant 0 : index
    %c0_21 = arith.constant 0 : index
    %c0_22 = arith.constant 0 : index
    %20 = vector.load %arg9[%c0_19, %c0_20, %c0_21, %c0_22] : memref<1x25x16x16xbf16, #tpu.memory_space<vmem>>, vector<1x25x16x16xbf16>
    %21 = vector.shape_cast %20 : vector<1x25x16x16xbf16> to vector<25x16x16xbf16>
    %22 = vector.shape_cast %19 : vector<25x16x16xbf16> to vector<1x25x16x16xbf16>
    tpu.vector_store %arg9[%c0_19, %c0_20, %c0_21, %c0_22], %22 {strides = array<i32>} : memref<1x25x16x16xbf16, #tpu.memory_space<vmem>>, vector<1x25x16x16xbf16>,
    %23 = arith.index_cast %arg0 : i32 to index
    %24 = memref.load %arg4[%23] : memref<2xi32, #tpu.memory_space<smem>>
    %c0_i32_23 = arith.constant 0 : i32
    %25 = arith.subi %24, %c0_i32_23 : i32
    %c1_i32 = arith.constant 1 : i32
    %c1_i32_24 = arith.constant 1 : i32
    %26 = arith.subi %c1_i32, %c1_i32_24 : i32
    %27 = arith.addi %25, %26 : i32
    %c1_i32_25 = arith.constant 1 : i32
    %28 = arith.divsi %27, %c1_i32_25 : i32
    %c1_i32_26 = arith.constant 1 : i32
    %c0_i32_27 = arith.constant 0 : i32
    %c0_i32_28 = arith.constant 0 : i32
    %29 = arith.subi %28, %c0_i32_28 : i32
    %30 = arith.addi %c0_i32_28, %29 : i32
    %c1_i32_29 = arith.constant 1 : i32
    scf.for %arg11 = %c0_i32_28 to %30 step %c1_i32_29  : i32 {
      %31 = arith.muli %arg11, %c1_i32_26 : i32
      %32 = arith.addi %c0_i32_27, %31 : i32
      %c25_i32 = arith.constant 25 : i32
      %33 = arith.muli %arg0, %c25_i32 : i32
      %34 = arith.addi %33, %32 : i32
      %35 = arith.index_cast %34 : i32 to index
      %36 = memref.load %arg3[%35] : memref<50xi32, #tpu.memory_space<smem>>
      %c4_i32 = arith.constant 4 : i32
      %37 = arith.muli %34, %c4_i32 : i32
      %c0_i32_30 = arith.constant 0 : i32
      %38 = arith.addi %37, %c0_i32_30 : i32
      %39 = arith.index_cast %38 : i32 to index
      %40 = memref.load %arg5[%39] : memref<200xf32, #tpu.memory_space<smem>>
      %c4_i32_31 = arith.constant 4 : i32
      %41 = arith.muli %34, %c4_i32_31 : i32
      %c1_i32_32 = arith.constant 1 : i32
      %42 = arith.addi %41, %c1_i32_32 : i32
      %43 = arith.index_cast %42 : i32 to index
      %44 = memref.load %arg5[%43] : memref<200xf32, #tpu.memory_space<smem>>
      %c4_i32_33 = arith.constant 4 : i32
      %45 = arith.muli %34, %c4_i32_33 : i32
      %c2_i32 = arith.constant 2 : i32
      %46 = arith.addi %45, %c2_i32 : i32
      %47 = arith.index_cast %46 : i32 to index
      %48 = memref.load %arg5[%47] : memref<200xf32, #tpu.memory_space<smem>>
      %c4_i32_34 = arith.constant 4 : i32
      %49 = arith.muli %34, %c4_i32_34 : i32
      %c3_i32 = arith.constant 3 : i32
      %50 = arith.addi %49, %c3_i32 : i32
      %51 = arith.index_cast %50 : i32 to index
      %52 = memref.load %arg5[%51] : memref<200xf32, #tpu.memory_space<smem>>
      %53 = vector.broadcast %36 : i32 to vector<16x16xi32>
      %54 = arith.cmpi eq, %4, %53 : vector<16x16xi32>
      %55 = arith.extui %54 : vector<16x16xi1> to vector<16x16xi32>
      %56 = arith.sitofp %55 : vector<16x16xi32> to vector<16x16xf32>
      %57 = vector.broadcast %40 : f32 to vector<16x16xf32>
      %58 = arith.subf %6, %57 : vector<16x16xf32>
      %59 = arith.mulf %58, %58 : vector<16x16xf32>
      %60 = vector.broadcast %48 : f32 to vector<16x16xf32>
      %61 = arith.mulf %59, %60 : vector<16x16xf32>
      %62 = vector.broadcast %44 : f32 to vector<16x16xf32>
      %63 = arith.subf %8, %62 : vector<16x16xf32>
      %64 = arith.mulf %63, %63 : vector<16x16xf32>
      %65 = vector.broadcast %52 : f32 to vector<16x16xf32>
      %66 = arith.mulf %64, %65 : vector<16x16xf32>
      %67 = arith.addf %61, %66 : vector<16x16xf32>
      %cst_35 = arith.constant 0.000000e+00 : f32
      %68 = vector.broadcast %cst_35 : f32 to vector<16x16xf32>
      %69 = arith.subf %68, %67 : vector<16x16xf32>
      %70 = math.exp %69 : vector<16x16xf32>
      %71 = arith.subf %56, %70 : vector<16x16xf32>
      %72 = math.absf %71 : vector<16x16xf32>
      %cst_36 = arith.constant 2.000000e+00 : f32
      %73 = vector.broadcast %cst_36 : f32 to vector<16x16xf32>
      %74 = arith.mulf %73, %72 : vector<16x16xf32>
      %75 = arith.truncf %74 : vector<16x16xf32> to vector<16x16xbf16>
      %c0_37 = arith.constant 0 : index
      %76 = arith.index_cast %32 : i32 to index
      %c0_38 = arith.constant 0 : index
      %c0_39 = arith.constant 0 : index
      %77 = vector.load %arg8[%c0_37, %76, %c0_38, %c0_39] : memref<1x25x16x16xbf16, #tpu.memory_space<vmem>>, vector<1x1x16x16xbf16>
      %78 = vector.shape_cast %77 : vector<1x1x16x16xbf16> to vector<16x16xbf16>
      %79 = vector.shape_cast %75 : vector<16x16xbf16> to vector<1x1x16x16xbf16>
      tpu.vector_store %arg8[%c0_37, %76, %c0_38, %c0_39], %79 {strides = array<i32>} : memref<1x25x16x16xbf16, #tpu.memory_space<vmem>>, vector<1x1x16x16xbf16>,
      %80 = arith.truncf %56 : vector<16x16xf32> to vector<16x16xbf16>
      %c0_40 = arith.constant 0 : index
      %81 = arith.index_cast %32 : i32 to index
      %c0_41 = arith.constant 0 : index
      %c0_42 = arith.constant 0 : index
      %82 = vector.load %arg9[%c0_40, %81, %c0_41, %c0_42] : memref<1x25x16x16xbf16, #tpu.memory_space<vmem>>, vector<1x1x16x16xbf16>
      %83 = vector.shape_cast %82 : vector<1x1x16x16xbf16> to vector<16x16xbf16>
      %84 = vector.shape_cast %80 : vector<16x16xbf16> to vector<1x1x16x16xbf16>
      tpu.vector_store %arg9[%c0_40, %81, %c0_41, %c0_42], %84 {strides = array<i32>} : memref<1x25x16x16xbf16, #tpu.memory_space<vmem>>, vector<1x1x16x16xbf16>,
      %85 = arith.subf %10, %70 : vector<16x16xf32>
      %86 = arith.mulf %85, %85 : vector<16x16xf32>
      %87 = arith.mulf %56, %86 : vector<16x16xf32>
      %88 = vector.shape_cast %87 : vector<16x16xf32> to vector<1x16x16xf32>
      %cst_43 = arith.constant dense<0.000000e+00> : vector<1xf32>
      %89 = vector.multi_reduction <add>, %88, %cst_43 [1, 2] : vector<1x16x16xf32> to vector<1xf32>
      %90 = vector.shape_cast %89 : vector<1xf32> to vector<1x1x1xf32>
      %91 = vector.extract %90[0, 0, 0] : f32 from vector<1x1x1xf32>
      %c0_44 = arith.constant 0 : index
      %c0_45 = arith.constant 0 : index
      %c0_46 = arith.constant 0 : index
      %92 = vector.load %arg10[%c0_44, %c0_45, %c0_46] : memref<1x8x128xf32, #tpu.memory_space<vmem>>, vector<1x8x128xf32>
      %93 = vector.shape_cast %92 : vector<1x8x128xf32> to vector<8x128xf32>
      %c0_i32_47 = arith.constant 0 : i32
      %94 = vector.broadcast %c0_i32_47 : i32 to vector<8x128xi32>
      %95 = arith.cmpi eq, %11, %94 : vector<8x128xi32>
      %96 = vector.broadcast %32 : i32 to vector<8x128xi32>
      %97 = arith.cmpi eq, %12, %96 : vector<8x128xi32>
      %98 = arith.andi %95, %97 : vector<8x128xi1>
      %cst_48 = arith.constant 0.000000e+00 : f32
      %99 = vector.broadcast %91 : f32 to vector<8x128xf32>
      %100 = vector.broadcast %cst_48 : f32 to vector<8x128xf32>
      %101 = arith.select %98, %99, %100 : vector<8x128xi1>, vector<8x128xf32>
      %102 = arith.addf %93, %101 : vector<8x128xf32>
      %c0_49 = arith.constant 0 : index
      %c0_50 = arith.constant 0 : index
      %c0_51 = arith.constant 0 : index
      %103 = vector.load %arg10[%c0_49, %c0_50, %c0_51] : memref<1x8x128xf32, #tpu.memory_space<vmem>>, vector<1x8x128xf32>
      %104 = vector.shape_cast %103 : vector<1x8x128xf32> to vector<8x128xf32>
      %105 = vector.shape_cast %102 : vector<8x128xf32> to vector<1x8x128xf32>
      tpu.vector_store %arg10[%c0_49, %c0_50, %c0_51], %105 {strides = array<i32>} : memref<1x8x128xf32, #tpu.memory_space<vmem>>, vector<1x8x128xf32>,
    }
    return
  }
  func.func @transform_0(%arg0: i32, %arg1: i32, %arg2: i32, %arg3: memref<50xi32, #tpu.memory_space<smem>>, %arg4: memref<2xi32, #tpu.memory_space<smem>>, %arg5: memref<200xf32, #tpu.memory_space<smem>>) -> (i32, i32, i32, i32) {
    %c0_i32 = arith.constant 0 : i32
    %c0_i32_0 = arith.constant 0 : i32
    return %arg0, %c0_i32, %arg1, %arg2 : i32, i32, i32, i32
  }
  func.func @transform_1(%arg0: i32, %arg1: i32, %arg2: i32, %arg3: memref<50xi32, #tpu.memory_space<smem>>, %arg4: memref<2xi32, #tpu.memory_space<smem>>, %arg5: memref<200xf32, #tpu.memory_space<smem>>) -> (i32, i32, i32) {
    %c0_i32 = arith.constant 0 : i32
    return %arg0, %arg1, %arg2 : i32, i32, i32
  }
  func.func @transform_2(%arg0: i32, %arg1: i32, %arg2: i32, %arg3: memref<50xi32, #tpu.memory_space<smem>>, %arg4: memref<2xi32, #tpu.memory_space<smem>>, %arg5: memref<200xf32, #tpu.memory_space<smem>>) -> (i32, i32, i32, i32) {
    %c0_i32 = arith.constant 0 : i32
    %c0_i32_0 = arith.constant 0 : i32
    return %arg0, %c0_i32, %arg1, %arg2 : i32, i32, i32, i32
  }
  func.func @transform_3(%arg0: i32, %arg1: i32, %arg2: i32, %arg3: memref<50xi32, #tpu.memory_space<smem>>, %arg4: memref<2xi32, #tpu.memory_space<smem>>, %arg5: memref<200xf32, #tpu.memory_space<smem>>) -> (i32, i32, i32, i32) {
    %c0_i32 = arith.constant 0 : i32
    %c0_i32_0 = arith.constant 0 : i32
    return %arg0, %c0_i32, %arg1, %arg2 : i32, i32, i32, i32
  }
  func.func @transform_4(%arg0: i32, %arg1: i32, %arg2: i32, %arg3: memref<50xi32, #tpu.memory_space<smem>>, %arg4: memref<2xi32, #tpu.memory_space<smem>>, %arg5: memref<200xf32, #tpu.memory_space<smem>>) -> (i32, i32, i32) {
    %c0_i32 = arith.constant 0 : i32
    %c0_i32_0 = arith.constant 0 : i32
    %c0_i32_1 = arith.constant 0 : i32
    return %arg0, %c0_i32, %c0_i32_0 : i32, i32, i32
  }
}

</mosaic_0001>

<bundles_post_ra>
// kernel: neg.2
= control target key start
LH: loop header
LB: loop body
LE: loop exit
PB: predicated region body
PF: predicated region fallthrough
CT: control target
= control target key end

     0   :  { %s1958_s0 = inlined_call_operand.vmem [shape: bf16[2,25,16,16], index: 0, kind: input, shape index: {}]   ;;  %s1959_s1 = inlined_call_operand.vmem [shape: bf16[2,25,16,16], index: 1, kind: output, shape index: {}]  }
   0x1   :  { %v1311_v0 = vld [vmem:[%s1958_s0] sm:$0xff]   ;;  %v1316_v1 = vld [vmem:[%s1958_s0 + $0xc8] sm:$0xff]   ;;  %v1329_v6 = vld [vmem:[%s1958_s0 + $0xd0] sm:$0xff]  }
   0x2   :  { %v1321_v2 = vld [vmem:[%s1958_s0 + $0x8] sm:$0xff]   ;;  %v3_v3 = vunpack.c.l.bf16 %v1311_v0  ;;  %v13_v4 = vunpack.c.l.bf16 %v1316_v1  ;;  %v1334_v7 = vld [vmem:[%s1958_s0 + $0x10] sm:$0xff]   ;;  %v1339_v8 = vld [vmem:[%s1958_s0 + $0xd8] sm:$0xff]   ;;  %v35_v9 = vunpack.c.l.bf16 %v1329_v6  ;;  %v552_v0 = vunpack.c.h.bf16 %v1311_v0 }
   0x3   :  { %v24_v5 = vunpack.c.l.bf16 %v1321_v2  ;;  %v46_v10 = vunpack.c.l.bf16 %v1334_v7  ;;  %v57_v11 = vunpack.c.l.bf16 %v1339_v8  ;;  %v1347_v12 = vld [vmem:[%s1958_s0 + $0x18] sm:$0xff]   ;;  %v1352_v13 = vld [vmem:[%s1958_s0 + $0xe0] sm:$0xff]   ;;  %v1364_v23 = vld [vmem:[%s1958_s0 + $0xe8] sm:$0xff]   ;;  %v563_v1 = vunpack.c.h.bf16 %v1316_v1 }
   0x4   :  { %v7_v14 = vxor.u32 2147483648, %v3_v3  ;;  %v17_v15 = vxor.u32 2147483648, %v13_v4  ;;  %v68_v17 = vunpack.c.l.bf16 %v1347_v12  ;;  %v1358_v18 = vld [vmem:[%s1958_s0 + $0x20] sm:$0xff]   ;;  %v39_v19 = vxor.u32 2147483648, %v35_v9  ;;  %v1369_v24 = vld [vmem:[%s1958_s0 + $0x28] sm:$0xff]   ;;  %v1374_v25 = vld [vmem:[%s1958_s0 + $0xf0] sm:$0xff]  }
   0x5   :  { %v28_v16 = vxor.u32 2147483648, %v24_v5  ;;  %v50_v20 = vxor.u32 2147483648, %v46_v10  ;;  %v61_v21 = vxor.u32 2147483648, %v57_v11  ;;  %v79_v22 = vunpack.c.l.bf16 %v1352_v13  ;;  %v1379_v30 = vld [vmem:[%s1958_s0 + $0x30] sm:$0xff]   ;;  %v1384_v31 = vld [vmem:[%s1958_s0 + $0xf8] sm:$0xff]   ;;  %v1400_v40 = vld [vmem:[%s1958_s0 + $0x100] sm:$0xff]  }
   0x6   :  { %v9_v26 = vpack.c.bf16 0.0, %v7_v14  ;;  %v20_v27 = vpack.c.bf16 0.0, %v17_v15  ;;  %v72_v29 = vxor.u32 2147483648, %v68_v17  ;;  %v42_v32 = vpack.c.bf16 0.0, %v39_v19  ;;  %v1389_v35 = vld [vmem:[%s1958_s0 + $0x38] sm:$0xff]   ;;  %v1415_v49 = vld [vmem:[%s1958_s0 + $0x40] sm:$0xff]  }
   0x7   :  { %v31_v28 = vpack.c.bf16 0.0, %v28_v16  ;;  %v53_v33 = vpack.c.bf16 0.0, %v50_v20  ;;  %v83_v34 = vxor.u32 2147483648, %v79_v22  ;;  %v64_v36 = vpack.c.bf16 0.0, %v61_v21  ;;  %v1424_v53 = vld [vmem:[%s1958_s0 + $0x108] sm:$0xff]   ;;  %v1437_v57 = vld [vmem:[%s1958_s0 + $0x110] sm:$0xff]  }
   0x8   :  { %10 = vst [vmem:[%s1959_s1] sm:$0xf] %v9_v26  ;;  %v90_v37 = vunpack.c.l.bf16 %v1358_v18  ;;  %v101_v38 = vunpack.c.l.bf16 %v1364_v23  ;;  %v112_v39 = vunpack.c.l.bf16 %v1369_v24  ;;  %v75_v41 = vpack.c.bf16 0.0, %v72_v29  ;;  %v1429_v54 = vld [vmem:[%s1958_s0 + $0x48] sm:$0xff]   ;;  %v1445_v61 = vld [vmem:[%s1958_s0 + $0x50] sm:$0xff]   ;;  %v1456_v5 = vld [vmem:[%s1958_s0 + $0x118] sm:$0xff]  }
   0x9   :  { %1101 = vst [vmem:[%s1959_s1 + $0xc8] sm:$0xf] %v20_v27  ;;  %v123_v42 = vunpack.c.l.bf16 %v1374_v25  ;;  %v134_v43 = vunpack.c.l.bf16 %v1379_v30  ;;  %v145_v44 = vunpack.c.l.bf16 %v1384_v31  ;;  %v156_v48 = vunpack.c.l.bf16 %v1389_v35  ;;  %v1465_v14 = vld [vmem:[%s1958_s0 + $0x58] sm:$0xff]   ;;  %v1474_v19 = vld [vmem:[%s1958_s0 + $0x120] sm:$0xff]  }
   0xa   :  { %1103 = vst [vmem:[%s1959_s1 + $0x8] sm:$0xf] %v31_v28  ;;  %v94_v45 = vxor.u32 2147483648, %v90_v37  ;;  %v105_v46 = vxor.u32 2147483648, %v101_v38  ;;  %v116_v47 = vxor.u32 2147483648, %v112_v39  ;;  %v86_v50 = vpack.c.bf16 0.0, %v83_v34 }
   0xb   :  { %1105 = vst [vmem:[%s1959_s1 + $0xd0] sm:$0xf] %v42_v32  ;;  %v127_v51 = vxor.u32 2147483648, %v123_v42  ;;  %v167_v52 = vunpack.c.l.bf16 %v1400_v40  ;;  %v138_v56 = vxor.u32 2147483648, %v134_v43  ;;  %v149_v60 = vxor.u32 2147483648, %v145_v44  ;;  %v1483_v26 = vld [vmem:[%s1958_s0 + $0x60] sm:$0xff]  }
   0xc   :  { %1107 = vst [vmem:[%s1959_s1 + $0x10] sm:$0xf] %v53_v33  ;;  %v97_v55 = vpack.c.bf16 0.0, %v94_v45  ;;  %v108_v58 = vpack.c.bf16 0.0, %v105_v46  ;;  %v119_v59 = vpack.c.bf16 0.0, %v116_v47  ;;  %v160_v62 = vxor.u32 2147483648, %v156_v48 }
   0xd   :  { %1109 = vst [vmem:[%s1959_s1 + $0xd8] sm:$0xf] %v64_v36  ;;  %v178_v63 = vunpack.c.l.bf16 %v1415_v49  ;;  %v189_v3 = vunpack.c.l.bf16 %v1424_v53  ;;  %v200_v4 = vunpack.c.l.bf16 %v1429_v54  ;;  %v130_v9 = vpack.c.bf16 0.0, %v127_v51  ;;  %v1492_v32 = vld [vmem:[%s1958_s0 + $0x128] sm:$0xff]   ;;  %v1510_v42 = vld [vmem:[%s1958_s0 + $0x130] sm:$0xff]   ;;  %v1528_v51 = vld [vmem:[%s1958_s0 + $0x138] sm:$0xff]  }
   0xe   :  { %1111 = vst [vmem:[%s1959_s1 + $0x18] sm:$0xf] %v75_v41  ;;  %v171_v10 = vxor.u32 2147483648, %v167_v52  ;;  %v211_v11 = vunpack.c.l.bf16 %v1437_v57  ;;  %v141_v15 = vpack.c.bf16 0.0, %v138_v56  ;;  %v222_v17 = vunpack.c.l.bf16 %v1445_v61  ;;  %v1501_v37 = vld [vmem:[%s1958_s0 + $0x68] sm:$0xff]   ;;  %v1519_v46 = vld [vmem:[%s1958_s0 + $0x70] sm:$0xff]  }
   0xf   :  { %1113 = vst [vmem:[%s1959_s1 + $0xe0] sm:$0xf] %v86_v50  ;;  %v182_v16 = vxor.u32 2147483648, %v178_v63  ;;  %v152_v20 = vpack.c.bf16 0.0, %v149_v60  ;;  %v193_v21 = vxor.u32 2147483648, %v189_v3  ;;  %v233_v22 = vunpack.c.l.bf16 %v1456_v5  ;;  %v1546_v63 = vld [vmem:[%s1958_s0 + $0x140] sm:$0xff]  }
  0x10   :  { %1115 = vst [vmem:[%s1959_s1 + $0x20] sm:$0xf] %v97_v55  ;;  %v163_v27 = vpack.c.bf16 0.0, %v160_v62  ;;  %v204_v28 = vxor.u32 2147483648, %v200_v4  ;;  %v244_v29 = vunpack.c.l.bf16 %v1465_v14  ;;  %v174_v33 = vpack.c.bf16 0.0, %v171_v10  ;;  %v1555_v10 = vld [vmem:[%s1958_s0 + $0x80] sm:$0xff]  }
  0x11   :  { %1117 = vst [vmem:[%s1959_s1 + $0xe8] sm:$0xf] %v108_v58  ;;  %v215_v34 = vxor.u32 2147483648, %v211_v11  ;;  %v255_v36 = vunpack.c.l.bf16 %v1474_v19  ;;  %v185_v38 = vpack.c.bf16 0.0, %v182_v16  ;;  %v226_v39 = vxor.u32 2147483648, %v222_v17  ;;  %v1537_v58 = vld [vmem:[%s1958_s0 + $0x78] sm:$0xff]  }
  0x12   :  { %1119 = vst [vmem:[%s1959_s1 + $0x28] sm:$0xf] %v119_v59  ;;  %v266_v41 = vunpack.c.l.bf16 %v1483_v26  ;;  %v196_v43 = vpack.c.bf16 0.0, %v193_v21  ;;  %v237_v44 = vxor.u32 2147483648, %v233_v22  ;;  %v277_v45 = vunpack.c.l.bf16 %v1492_v32  ;;  %v1564_v17 = vld [vmem:[%s1958_s0 + $0x148] sm:$0xff]  }
  0x13   :  { %1121 = vst [vmem:[%s1959_s1 + $0xf0] sm:$0xf] %v130_v9  ;;  %v207_v47 = vpack.c.bf16 0.0, %v204_v28  ;;  %v248_v48 = vxor.u32 2147483648, %v244_v29  ;;  %v288_v50 = vunpack.c.l.bf16 %v1501_v37  ;;  %v218_v52 = vpack.c.bf16 0.0, %v215_v34  ;;  %v1582_v34 = vld [vmem:[%s1958_s0 + $0x150] sm:$0xff]  }
  0x14   :  { %1123 = vst [vmem:[%s1959_s1 + $0x30] sm:$0xf] %v141_v15  ;;  %v259_v55 = vxor.u32 2147483648, %v255_v36  ;;  %v299_v56 = vunpack.c.l.bf16 %v1510_v42  ;;  %v229_v59 = vpack.c.bf16 0.0, %v226_v39  ;;  %v270_v60 = vxor.u32 2147483648, %v266_v41  ;;  %v1591_v41 = vld [vmem:[%s1958_s0 + $0x90] sm:$0xff]  }
  0x15   :  { %1125 = vst [vmem:[%s1959_s1 + $0xf8] sm:$0xf] %v152_v20  ;;  %v310_v62 = vunpack.c.l.bf16 %v1519_v46  ;;  %v240_v3 = vpack.c.bf16 0.0, %v237_v44  ;;  %v281_v4 = vxor.u32 2147483648, %v277_v45  ;;  %v321_v9 = vunpack.c.l.bf16 %v1528_v51 }
  0x16   :  { %1127 = vst [vmem:[%s1959_s1 + $0x38] sm:$0xf] %v163_v27  ;;  %v251_v11 = vpack.c.bf16 0.0, %v248_v48  ;;  %v292_v15 = vxor.u32 2147483648, %v288_v50  ;;  %v332_v16 = vunpack.c.l.bf16 %v1537_v58  ;;  %v262_v20 = vpack.c.bf16 0.0, %v259_v55  ;;  %v1573_v27 = vld [vmem:[%s1958_s0 + $0x88] sm:$0xff]  }
  0x17   :  { %1129 = vst [vmem:[%s1959_s1 + $0x100] sm:$0xf] %v174_v33  ;;  %v303_v21 = vxor.u32 2147483648, %v299_v56  ;;  %v343_v22 = vunpack.c.l.bf16 %v1546_v63  ;;  %v273_v28 = vpack.c.bf16 0.0, %v270_v60  ;;  %v314_v29 = vxor.u32 2147483648, %v310_v62  ;;  %v1609_v55 = vld [vmem:[%s1958_s0 + $0x98] sm:$0xff]  }
  0x18   :  { %1131 = vst [vmem:[%s1959_s1 + $0x40] sm:$0xf] %v185_v38  ;;  %v354_v33 = vunpack.c.l.bf16 %v1555_v10  ;;  %v284_v36 = vpack.c.bf16 0.0, %v281_v4  ;;  %v325_v38 = vxor.u32 2147483648, %v321_v9  ;;  %v365_v39 = vunpack.c.l.bf16 %v1564_v17  ;;  %v1618_v62 = vld [vmem:[%s1958_s0 + $0x160] sm:$0xff]  }
  0x19   :  { %1133 = vst [vmem:[%s1959_s1 + $0x108] sm:$0xf] %v196_v43  ;;  %v295_v43 = vpack.c.bf16 0.0, %v292_v15  ;;  %v336_v44 = vxor.u32 2147483648, %v332_v16  ;;  %v376_v45 = vunpack.c.l.bf16 %v1573_v27  ;;  %v306_v48 = vpack.c.bf16 0.0, %v303_v21  ;;  %v1636_v21 = vld [vmem:[%s1958_s0 + $0x168] sm:$0xff]  }
  0x1a   :  { %1135 = vst [vmem:[%s1959_s1 + $0x48] sm:$0xf] %v207_v47  ;;  %v1600_v47 = vld [vmem:[%s1958_s0 + $0x158] sm:$0xff]   ;;  %v347_v50 = vxor.u32 2147483648, %v343_v22  ;;  %v317_v56 = vpack.c.bf16 0.0, %v314_v29  ;;  %v398_v60 = vunpack.c.l.bf16 %v1591_v41  ;;  %v369_v4 = vxor.u32 2147483648, %v365_v39 }
  0x1b   :  { %1137 = vst [vmem:[%s1959_s1 + $0x110] sm:$0xf] %v218_v52  ;;  %v387_v52 = vunpack.c.l.bf16 %v1582_v34  ;;  %v409_v9 = vunpack.c.l.bf16 %v1600_v47  ;;  %v339_v15 = vpack.c.bf16 0.0, %v336_v44  ;;  %v380_v16 = vxor.u32 2147483648, %v376_v45 }
  0x1c   :  { %1139 = vst [vmem:[%s1959_s1 + $0x50] sm:$0xf] %v229_v59  ;;  %v358_v59 = vxor.u32 2147483648, %v354_v33  ;;  %v350_v22 = vpack.c.bf16 0.0, %v347_v50  ;;  %v431_v29 = vunpack.c.l.bf16 %v1618_v62  ;;  %v1645_v33 = vld [vmem:[%s1958_s0 + $0xa8] sm:$0xff]   ;;  %v372_v44 = vpack.c.bf16 0.0, %v369_v4 }
  0x1d   :  { %1141 = vst [vmem:[%s1959_s1 + $0x118] sm:$0xf] %v240_v3  ;;  %v328_v3 = vpack.c.bf16 0.0, %v325_v38  ;;  %v402_v38 = vxor.u32 2147483648, %v398_v60  ;;  %v413_v45 = vxor.u32 2147483648, %v409_v9  ;;  %v1663_v50 = vld [vmem:[%s1958_s0 + $0xb0] sm:$0xff]   ;;  %v574_v2 = vunpack.c.h.bf16 %v1321_v2 }
  0x1e   :  { %1143 = vst [vmem:[%s1959_s1 + $0x58] sm:$0xf] %v251_v11  ;;  %v1627_v11 = vld [vmem:[%s1958_s0 + $0xa0] sm:$0xff]   ;;  %v1672_v60 = vld [vmem:[%s1958_s0 + $0x178] sm:$0xff]   ;;  %v435_v4 = vxor.u32 2147483648, %v431_v29  ;;  %v585_v6 = vunpack.c.h.bf16 %v1329_v6  ;;  %v596_v7 = vunpack.c.h.bf16 %v1334_v7  ;;  %v607_v8 = vunpack.c.h.bf16 %v1339_v8 }
  0x1f   :  { %1145 = vst [vmem:[%s1959_s1 + $0x120] sm:$0xf] %v262_v20  ;;  %v420_v20 = vunpack.c.l.bf16 %v1609_v55  ;;  %v442_v39 = vunpack.c.l.bf16 %v1627_v11  ;;  %v416_v29 = vpack.c.bf16 0.0, %v413_v45  ;;  %v618_v12 = vunpack.c.h.bf16 %v1347_v12 }
  0x20   :  { %1147 = vst [vmem:[%s1959_s1 + $0x60] sm:$0xf] %v273_v28  ;;  %v391_v28 = vxor.u32 2147483648, %v387_v52  ;;  %v383_v52 = vpack.c.bf16 0.0, %v380_v16  ;;  %v405_v16 = vpack.c.bf16 0.0, %v402_v38  ;;  %v497_v38 = vunpack.c.l.bf16 %v1672_v60 }
  0x21   :  { %1149 = vst [vmem:[%s1959_s1 + $0x128] sm:$0xf] %v284_v36  ;;  %v361_v36 = vpack.c.bf16 0.0, %v358_v59  ;;  %v464_v59 = vunpack.c.l.bf16 %v1645_v33  ;;  %v629_v13 = vunpack.c.h.bf16 %v1352_v13  ;;  %v640_v18 = vunpack.c.h.bf16 %v1358_v18 }
  0x22   :  { %1151 = vst [vmem:[%s1959_s1 + $0x68] sm:$0xf] %v295_v43  ;;  %v1654_v43 = vld [vmem:[%s1958_s0 + $0x170] sm:$0xff]   ;;  %v651_v23 = vunpack.c.h.bf16 %v1364_v23  ;;  %v662_v24 = vunpack.c.h.bf16 %v1369_v24  ;;  %v673_v25 = vunpack.c.h.bf16 %v1374_v25  ;;  %v684_v30 = vunpack.c.h.bf16 %v1379_v30 }
  0x23   :  { %1153 = vst [vmem:[%s1959_s1 + $0x130] sm:$0xf] %v306_v48  ;;  %v453_v48 = vunpack.c.l.bf16 %v1636_v21  ;;  %v475_v9 = vunpack.c.l.bf16 %v1654_v43  ;;  %v468_v45 = vxor.u32 2147483648, %v464_v59  ;;  %v695_v31 = vunpack.c.h.bf16 %v1384_v31 }
  0x24   :  { %1155 = vst [vmem:[%s1959_s1 + $0x70] sm:$0xf] %v317_v56  ;;  %v424_v56 = vxor.u32 2147483648, %v420_v20  ;;  %v446_v20 = vxor.u32 2147483648, %v442_v39  ;;  %v1699_v39 = vld [vmem:[%s1958_s0 + $0xc0] sm:$0xff]   ;;  %v706_v35 = vunpack.c.h.bf16 %v1389_v35  ;;  %v717_v40 = vunpack.c.h.bf16 %v1400_v40 }
  0x25   :  { %1157 = vst [vmem:[%s1959_s1 + $0x138] sm:$0xf] %v328_v3  ;;  %v394_v3 = vpack.c.bf16 0.0, %v391_v28  ;;  %v1690_v28 = vld [vmem:[%s1958_s0 + $0x180] sm:$0xff]   ;;  %v479_v59 = vxor.u32 2147483648, %v475_v9  ;;  %v728_v49 = vunpack.c.h.bf16 %v1415_v49  ;;  %v739_v53 = vunpack.c.h.bf16 %v1424_v53 }
  0x26   :  { %1159 = vst [vmem:[%s1959_s1 + $0x78] sm:$0xf] %v339_v15  ;;  %v1681_v15 = vld [vmem:[%s1958_s0 + $0xb8] sm:$0xff]   ;;  %v750_v54 = vunpack.c.h.bf16 %v1429_v54  ;;  %v761_v57 = vunpack.c.h.bf16 %v1437_v57  ;;  %v772_v61 = vunpack.c.h.bf16 %v1445_v61  ;;  %v783_v5 = vunpack.c.h.bf16 %v1456_v5 }
  0x27   :  { %1161 = vst [vmem:[%s1959_s1 + $0x140] sm:$0xf] %v350_v22  ;;  %v486_v22 = vunpack.c.l.bf16 %v1663_v50  ;;  %v794_v14 = vunpack.c.h.bf16 %v1465_v14  ;;  %v805_v19 = vunpack.c.h.bf16 %v1474_v19  ;;  %v816_v26 = vunpack.c.h.bf16 %v1483_v26 }
  0x28   :  { %1163 = vst [vmem:[%s1959_s1 + $0x80] sm:$0xf] %v361_v36  ;;  %v457_v36 = vxor.u32 2147483648, %v453_v48  ;;  %v508_v48 = vunpack.c.l.bf16 %v1681_v15  ;;  %v827_v32 = vunpack.c.h.bf16 %v1492_v32  ;;  %v838_v37 = vunpack.c.h.bf16 %v1501_v37 }
  0x29   :  { %1165 = vst [vmem:[%s1959_s1 + $0x148] sm:$0xf] %v372_v44  ;;  %v427_v44 = vpack.c.bf16 0.0, %v424_v56  ;;  %v438_v56 = vpack.c.bf16 0.0, %v435_v4  ;;  %v449_v4 = vpack.c.bf16 0.0, %v446_v20  ;;  %v490_v9 = vxor.u32 2147483648, %v486_v22 }
  0x2a   :  { %1167 = vst [vmem:[%s1959_s1 + $0x88] sm:$0xf] %v383_v52  ;;  %v1708_v52 = vld [vmem:[%s1958_s0 + $0x188] sm:$0xff]   ;;  %v460_v20 = vpack.c.bf16 0.0, %v457_v36  ;;  %v501_v22 = vxor.u32 2147483648, %v497_v38  ;;  %v471_v36 = vpack.c.bf16 0.0, %v468_v45  ;;  %v849_v42 = vunpack.c.h.bf16 %v1510_v42 }
  0x2b   :  { %1169 = vst [vmem:[%s1959_s1 + $0x150] sm:$0xf] %v394_v3  ;;  %v519_v3 = vunpack.c.l.bf16 %v1690_v28  ;;  %v512_v38 = vxor.u32 2147483648, %v508_v48  ;;  %v493_v48 = vpack.c.bf16 0.0, %v490_v9  ;;  %v556_v9 = vxor.u32 2147483648, %v552_v0 }
  0x2c   :  { %1171 = vst [vmem:[%s1959_s1 + $0x90] sm:$0xf] %v405_v16  ;;  %v530_v16 = vunpack.c.l.bf16 %v1699_v39  ;;  %v860_v46 = vunpack.c.h.bf16 %v1519_v46  ;;  %v871_v51 = vunpack.c.h.bf16 %v1528_v51  ;;  %v882_v58 = vunpack.c.h.bf16 %v1537_v58 }
  0x2d   :  { %1173 = vst [vmem:[%s1959_s1 + $0x158] sm:$0xf] %v416_v29  ;;  %v541_v29 = vunpack.c.l.bf16 %v1708_v52  ;;  %v523_v45 = vxor.u32 2147483648, %v519_v3  ;;  %v559_v0 = vpack.c.bf16 0.0, %v556_v9  ;;  %v655_v9 = vxor.u32 2147483648, %v651_v23 }
  0x2e   :  { %1175 = vst [vmem:[%s1959_s1 + $0x98] sm:$0xf] %v427_v44  ;;  %v482_v44 = vpack.c.bf16 0.0, %v479_v59  ;;  %v504_v59 = vpack.c.bf16 0.0, %v501_v22  ;;  %v743_v23 = vxor.u32 2147483648, %v739_v53  ;;  %v893_v63 = vunpack.c.h.bf16 %v1546_v63 }
  0x2f   :  { %1177 = vst [vmem:[%s1959_s1 + $0x160] sm:$0xf] %v438_v56  ;;  %v534_v56 = vxor.u32 2147483648, %v530_v16  ;;  %v545_v3 = vxor.u32 2147483648, %v541_v29  ;;  %v526_v16 = vpack.c.bf16 0.0, %v523_v45  ;;  %v578_v29 = vxor.u32 2147483648, %v574_v2 }
  0x30   :  { %1179 = vst [vmem:[%s1959_s1 + $0xa0] sm:$0xf] %v449_v4  ;;  %v515_v4 = vpack.c.bf16 0.0, %v512_v38  ;;  %v589_v38 = vxor.u32 2147483648, %v585_v6  ;;  %v644_v6 = vxor.u32 2147483648, %v640_v18  ;;  %v904_v10 = vunpack.c.h.bf16 %v1555_v10 }
  0x31   :  { %1181 = vst [vmem:[%s1959_s1 + $0x168] sm:$0xf] %v460_v20  ;;  %v567_v20 = vxor.u32 2147483648, %v563_v1  ;;  %v537_v22 = vpack.c.bf16 0.0, %v534_v56  ;;  %v611_v1 = vxor.u32 2147483648, %v607_v8  ;;  %v622_v56 = vxor.u32 2147483648, %v618_v12 }
  0x32   :  { %1183 = vst [vmem:[%s1959_s1 + $0xa8] sm:$0xf] %v471_v36  ;;  %v548_v36 = vpack.c.bf16 0.0, %v545_v3  ;;  %v592_v2 = vpack.c.bf16 0.0, %v589_v38  ;;  %v677_v8 = vxor.u32 2147483648, %v673_v25  ;;  %v658_v12 = vpack.c.bf16 0.0, %v655_v9 }
  0x33   :  { %1185 = vst [vmem:[%s1959_s1 + $0x170] sm:$0xf] %v482_v44  ;;  %v600_v44 = vxor.u32 2147483648, %v596_v7  ;;  %v570_v45 = vpack.c.bf16 0.0, %v567_v20  ;;  %v625_v7 = vpack.c.bf16 0.0, %v622_v56  ;;  %v754_v56 = vxor.u32 2147483648, %v750_v54 }
  0x34   :  { %1187 = vst [vmem:[%s1959_s1 + $0xb0] sm:$0xf] %v493_v48  ;;  %v581_v48 = vpack.c.bf16 0.0, %v578_v29  ;;  %v688_v29 = vxor.u32 2147483648, %v684_v30  ;;  %v776_v25 = vxor.u32 2147483648, %v772_v61  ;;  %v875_v53 = vxor.u32 2147483648, %v871_v51 }
  0x35   :  { %1189 = vst [vmem:[%s1959_s1 + $0x178] sm:$0xf] %v504_v59  ;;  %v633_v59 = vxor.u32 2147483648, %v629_v13  ;;  %v603_v3 = vpack.c.bf16 0.0, %v600_v44  ;;  %v710_v13 = vxor.u32 2147483648, %v706_v35  ;;  %v721_v44 = vxor.u32 2147483648, %v717_v40 }
  0x36   :  { %1191 = vst [vmem:[%s1959_s1 + $0xb8] sm:$0xf] %v515_v4  ;;  %v614_v4 = vpack.c.bf16 0.0, %v611_v1  ;;  %v691_v18 = vpack.c.bf16 0.0, %v688_v29  ;;  %v757_v30 = vpack.c.bf16 0.0, %v754_v56  ;;  %v842_v40 = vxor.u32 2147483648, %v838_v37 }
  0x37   :  { %1193 = vst [vmem:[%s1959_s1 + $0x180] sm:$0xf] %v526_v16  ;;  %v666_v16 = vxor.u32 2147483648, %v662_v24  ;;  %v636_v20 = vpack.c.bf16 0.0, %v633_v59  ;;  %v724_v24 = vpack.c.bf16 0.0, %v721_v44  ;;  %v853_v29 = vxor.u32 2147483648, %v849_v42 }
  0x38   :  { %1195 = vst [vmem:[%s1959_s1 + $0xc0] sm:$0xf] %v537_v22  ;;  %v647_v22 = vpack.c.bf16 0.0, %v644_v6  ;;  %v787_v6 = vxor.u32 2147483648, %v783_v5  ;;  %v915_v17 = vunpack.c.h.bf16 %v1564_v17  ;;  %v926_v27 = vunpack.c.h.bf16 %v1573_v27 }
  0x39   :  { %1197 = vst [vmem:[%s1959_s1 + $0x188] sm:$0xf] %v548_v36  ;;  %v699_v36 = vxor.u32 2147483648, %v695_v31  ;;  %v669_v38 = vpack.c.bf16 0.0, %v666_v16  ;;  %v809_v31 = vxor.u32 2147483648, %v805_v19  ;;  %v820_v16 = vxor.u32 2147483648, %v816_v26 }
  0x3a   :  { %1199 = vst [vmem:[%s1959_s1 + $0x4] sm:$0xf] %v559_v0  ;;  %v680_v0 = vpack.c.bf16 0.0, %v677_v8  ;;  %v790_v35 = vpack.c.bf16 0.0, %v787_v6  ;;  %v856_v54 = vpack.c.bf16 0.0, %v853_v29  ;;  %v937_v34 = vunpack.c.h.bf16 %v1582_v34 }
  0x3b   :  { %1201 = vst [vmem:[%s1959_s1 + $0xcc] sm:$0xf] %v570_v45  ;;  %v732_v45 = vxor.u32 2147483648, %v728_v49  ;;  %v702_v1 = vpack.c.bf16 0.0, %v699_v36  ;;  %v823_v49 = vpack.c.bf16 0.0, %v820_v16  ;;  %v948_v41 = vunpack.c.h.bf16 %v1591_v41 }
  0x3c   :  { %1203 = vst [vmem:[%s1959_s1 + $0xc] sm:$0xf] %v581_v48  ;;  %v713_v48 = vpack.c.bf16 0.0, %v710_v13  ;;  %v886_v13 = vxor.u32 2147483648, %v882_v58  ;;  %v959_v47 = vunpack.c.h.bf16 %v1600_v47  ;;  %v970_v55 = vunpack.c.h.bf16 %v1609_v55 }
  0x3d   :  { %1205 = vst [vmem:[%s1959_s1 + $0xd4] sm:$0xf] %v592_v2  ;;  %v765_v2 = vxor.u32 2147483648, %v761_v57  ;;  %v735_v59 = vpack.c.bf16 0.0, %v732_v45  ;;  %v908_v57 = vxor.u32 2147483648, %v904_v10  ;;  %v919_v45 = vxor.u32 2147483648, %v915_v17 }
  0x3e   :  { %1207 = vst [vmem:[%s1959_s1 + $0x14] sm:$0xf] %v603_v3  ;;  %v746_v3 = vpack.c.bf16 0.0, %v743_v23  ;;  %v889_v61 = vpack.c.bf16 0.0, %v886_v13  ;;  %v941_v5 = vxor.u32 2147483648, %v937_v34  ;;  %v981_v62 = vunpack.c.h.bf16 %v1618_v62 }
  0x3f   :  { %1209 = vst [vmem:[%s1959_s1 + $0xdc] sm:$0xf] %v614_v4  ;;  %v798_v4 = vxor.u32 2147483648, %v794_v14  ;;  %v768_v9 = vpack.c.bf16 0.0, %v765_v2  ;;  %v952_v56 = vxor.u32 2147483648, %v948_v41  ;;  %v992_v11 = vunpack.c.h.bf16 %v1627_v11 }
  0x40   :  { %1211 = vst [vmem:[%s1959_s1 + $0x1c] sm:$0xf] %v625_v7  ;;  %v779_v7 = vpack.c.bf16 0.0, %v776_v25  ;;  %v922_v14 = vpack.c.bf16 0.0, %v919_v45  ;;  %v1003_v21 = vunpack.c.h.bf16 %v1636_v21  ;;  %v974_v19 = vxor.u32 2147483648, %v970_v55 }
  0x41   :  { %1213 = vst [vmem:[%s1959_s1 + $0xe4] sm:$0xf] %v636_v20  ;;  %v831_v20 = vxor.u32 2147483648, %v827_v32  ;;  %v801_v8 = vpack.c.bf16 0.0, %v798_v4  ;;  %v1014_v33 = vunpack.c.h.bf16 %v1645_v33  ;;  %v985_v25 = vxor.u32 2147483648, %v981_v62 }
  0x42   :  { %1215 = vst [vmem:[%s1959_s1 + $0x24] sm:$0xf] %v647_v22  ;;  %v812_v22 = vpack.c.bf16 0.0, %v809_v31  ;;  %v1025_v43 = vunpack.c.h.bf16 %v1654_v43  ;;  %v955_v26 = vpack.c.bf16 0.0, %v952_v56  ;;  %v1036_v50 = vunpack.c.h.bf16 %v1663_v50 }
  0x43   :  { %1217 = vst [vmem:[%s1959_s1 + $0xec] sm:$0xf] %v658_v12  ;;  %v864_v12 = vxor.u32 2147483648, %v860_v46  ;;  %v834_v36 = vpack.c.bf16 0.0, %v831_v20  ;;  %v1007_v32 = vxor.u32 2147483648, %v1003_v21  ;;  %v1047_v60 = vunpack.c.h.bf16 %v1672_v60 }
  0x44   :  { %1219 = vst [vmem:[%s1959_s1 + $0x2c] sm:$0xf] %v669_v38  ;;  %v845_v38 = vpack.c.bf16 0.0, %v842_v40  ;;  %v1018_v4 = vxor.u32 2147483648, %v1014_v33  ;;  %v1058_v15 = vunpack.c.h.bf16 %v1681_v15  ;;  %v988_v37 = vpack.c.bf16 0.0, %v985_v25 }
  0x45   :  { %1221 = vst [vmem:[%s1959_s1 + $0xf4] sm:$0xf] %v680_v0  ;;  %v897_v0 = vxor.u32 2147483648, %v893_v63  ;;  %v867_v44 = vpack.c.bf16 0.0, %v864_v12  ;;  %v1069_v28 = vunpack.c.h.bf16 %v1690_v28  ;;  %v1040_v42 = vxor.u32 2147483648, %v1036_v50 }
  0x46   :  { %1223 = vst [vmem:[%s1959_s1 + $0x34] sm:$0xf] %v691_v18  ;;  %v878_v18 = vpack.c.bf16 0.0, %v875_v53  ;;  %v1080_v39 = vunpack.c.h.bf16 %v1699_v39  ;;  %v1051_v16 = vxor.u32 2147483648, %v1047_v60  ;;  %v1091_v52 = vunpack.c.h.bf16 %v1708_v52 }
  0x47   :  { %1225 = vst [vmem:[%s1959_s1 + $0xfc] sm:$0xf] %v702_v1  ;;  %v930_v1 = vxor.u32 2147483648, %v926_v27  ;;  %v900_v23 = vpack.c.bf16 0.0, %v897_v0  ;;  %v1021_v46 = vpack.c.bf16 0.0, %v1018_v4  ;;  %v1073_v51 = vxor.u32 2147483648, %v1069_v28 }
  0x48   :  { %1227 = vst [vmem:[%s1959_s1 + $0x3c] sm:$0xf] %v713_v48  ;;  %v911_v48 = vpack.c.bf16 0.0, %v908_v57  ;;  %v1084_v40 = vxor.u32 2147483648, %v1080_v39  ;;  %v1054_v58 = vpack.c.bf16 0.0, %v1051_v16 }
  0x49   :  { %1229 = vst [vmem:[%s1959_s1 + $0x104] sm:$0xf] %v724_v24  ;;  %v963_v24 = vxor.u32 2147483648, %v959_v47  ;;  %v933_v2 = vpack.c.bf16 0.0, %v930_v1  ;;  %v1076_v63 = vpack.c.bf16 0.0, %v1073_v51 }
  0x4a   :  { %1231 = vst [vmem:[%s1959_s1 + $0x44] sm:$0xf] %v735_v59  ;;  %v944_v59 = vpack.c.bf16 0.0, %v941_v5 }
  0x4b   :  { %1233 = vst [vmem:[%s1959_s1 + $0x10c] sm:$0xf] %v746_v3  ;;  %v996_v3 = vxor.u32 2147483648, %v992_v11  ;;  %v966_v6 = vpack.c.bf16 0.0, %v963_v24 }
  0x4c   :  { %1235 = vst [vmem:[%s1959_s1 + $0x4c] sm:$0xf] %v757_v30  ;;  %v977_v30 = vpack.c.bf16 0.0, %v974_v19 }
  0x4d   :  { %1237 = vst [vmem:[%s1959_s1 + $0x114] sm:$0xf] %v768_v9  ;;  %v1029_v9 = vxor.u32 2147483648, %v1025_v43  ;;  %v999_v31 = vpack.c.bf16 0.0, %v996_v3 }
  0x4e   :  { %1239 = vst [vmem:[%s1959_s1 + $0x54] sm:$0xf] %v779_v7  ;;  %v1010_v7 = vpack.c.bf16 0.0, %v1007_v32 }
  0x4f   :  { %1241 = vst [vmem:[%s1959_s1 + $0x11c] sm:$0xf] %v790_v35  ;;  %v1062_v35 = vxor.u32 2147483648, %v1058_v15  ;;  %v1032_v20 = vpack.c.bf16 0.0, %v1029_v9 }
  0x50   :  { %1243 = vst [vmem:[%s1959_s1 + $0x5c] sm:$0xf] %v801_v8  ;;  %v1043_v8 = vpack.c.bf16 0.0, %v1040_v42 }
  0x51   :  { %1245 = vst [vmem:[%s1959_s1 + $0x124] sm:$0xf] %v812_v22  ;;  %v1095_v22 = vxor.u32 2147483648, %v1091_v52  ;;  %v1065_v29 = vpack.c.bf16 0.0, %v1062_v35 }
  0x52   :  { %1247 = vst [vmem:[%s1959_s1 + $0x64] sm:$0xf] %v823_v49  ;;  %v1087_v49 = vpack.c.bf16 0.0, %v1084_v40 }
  0x53   :  { %1249 = vst [vmem:[%s1959_s1 + $0x12c] sm:$0xf] %v834_v36  ;;  %v1098_v12 = vpack.c.bf16 0.0, %v1095_v22 }
  0x54   :  { %1251 = vst [vmem:[%s1959_s1 + $0x6c] sm:$0xf] %v845_v38 }
  0x55   :  { %1253 = vst [vmem:[%s1959_s1 + $0x134] sm:$0xf] %v856_v54 }
  0x56   :  { %1255 = vst [vmem:[%s1959_s1 + $0x74] sm:$0xf] %v867_v44 }
  0x57   :  { %1257 = vst [vmem:[%s1959_s1 + $0x13c] sm:$0xf] %v878_v18 }
  0x58   :  { %1259 = vst [vmem:[%s1959_s1 + $0x7c] sm:$0xf] %v889_v61 }
  0x59   :  { %1261 = vst [vmem:[%s1959_s1 + $0x144] sm:$0xf] %v900_v23 }
  0x5a   :  { %1263 = vst [vmem:[%s1959_s1 + $0x84] sm:$0xf] %v911_v48 }
  0x5b   :  { %1265 = vst [vmem:[%s1959_s1 + $0x14c] sm:$0xf] %v922_v14 }
  0x5c   :  { %1267 = vst [vmem:[%s1959_s1 + $0x8c] sm:$0xf] %v933_v2 }
  0x5d   :  { %1269 = vst [vmem:[%s1959_s1 + $0x154] sm:$0xf] %v944_v59 }
  0x5e   :  { %1271 = vst [vmem:[%s1959_s1 + $0x94] sm:$0xf] %v955_v26 }
  0x5f   :  { %1273 = vst [vmem:[%s1959_s1 + $0x15c] sm:$0xf] %v966_v6 }
  0x60   :  { %1275 = vst [vmem:[%s1959_s1 + $0x9c] sm:$0xf] %v977_v30 }
  0x61   :  { %1277 = vst [vmem:[%s1959_s1 + $0x164] sm:$0xf] %v988_v37 }
  0x62   :  { %1279 = vst [vmem:[%s1959_s1 + $0xa4] sm:$0xf] %v999_v31 }
  0x63   :  { %1281 = vst [vmem:[%s1959_s1 + $0x16c] sm:$0xf] %v1010_v7 }
  0x64   :  { %1283 = vst [vmem:[%s1959_s1 + $0xac] sm:$0xf] %v1021_v46 }
  0x65   :  { %1285 = vst [vmem:[%s1959_s1 + $0x174] sm:$0xf] %v1032_v20 }
  0x66   :  { %1287 = vst [vmem:[%s1959_s1 + $0xb4] sm:$0xf] %v1043_v8 }
  0x67   :  { %1289 = vst [vmem:[%s1959_s1 + $0x17c] sm:$0xf] %v1054_v58 }
  0x68   :  { %1291 = vst [vmem:[%s1959_s1 + $0xbc] sm:$0xf] %v1065_v29 }
  0x69   :  { %1293 = vst [vmem:[%s1959_s1 + $0x184] sm:$0xf] %v1076_v63 }
  0x6a   :  { %1295 = vst [vmem:[%s1959_s1 + $0xc4] sm:$0xf] %v1087_v49 }
  0x6b   :  { %1297 = vst [vmem:[%s1959_s1 + $0x18c] sm:$0xf] %v1098_v12 }

// kernel: _forward.2
= control target key start
LH: loop header
LB: loop body
LE: loop exit
PB: predicated region body
PF: predicated region fallthrough
CT: control target
= control target key end

     0   :  { %s1404_s11 = smov [#allocation3]   ;;  %s1405_s12 = smov [#allocation4]   ;;  %s1769_s0 = inlined_call_operand.vmem [shape: s32[50], index: 0, kind: input, shape index: {}]   ;;  %s1770_s2 = inlined_call_operand.vmem [shape: f32[2,10,16,16], index: 2, kind: input, shape index: {}]   ;;  %s1771_s3 = inlined_call_operand.vmem [shape: f32[2,3,16,16], index: 3, kind: input, shape index: {}]   ;;  %s1772_s4 = inlined_call_operand.vmem [shape: s32[2,16,16], index: 4, kind: input, shape index: {}]   ;;  %s1773_s5 = inlined_call_operand.vmem [shape: s32[2,16,16], index: 5, kind: input, shape index: {}]   ;;  %s1774_s6 = inlined_call_operand.vmem [shape: f32[2,3,16,16], index: 6, kind: output, shape index: {0}]   ;;  %s1775_s7 = inlined_call_operand.vmem [shape: f32[2,8,128], index: 7, kind: output, shape index: {1}]   ;;  %s1776_s8 = inlined_call_operand.vmem [shape: f32[2,8,128], index: 8, kind: output, shape index: {2}]   ;;  %s1777_s1 = inlined_call_operand.vmem [shape: s32[2], index: 1, kind: input, shape index: {}]  }
   0x1   :  { %s15_s29 = sshll.u32 %s1769_s0, 4  ;;  %s20_s10 = sshll.u32 %s1777_s1, 4  ;;  %s16_s29 = int_to_ptr.vmem [resolvable:$true] %s15_s29  ;;  %s21_s10 = int_to_ptr.vmem [resolvable:$true] %s20_s10 }
   0x2   :  { %18 = dma.vmem_to_smem %s16_s29, 16, %s1404_s11, [#allocation2] }
   0x3   :  { %23 = dma.vmem_to_smem %s21_s10, 16, %s1405_s12, [#allocation2] }
   0x4   :  { %1386 = dma.done.wait [#allocation2], 32 }
   0x5   :  { %1387 = vsyncadd [#allocation2], 4294967264 }
   0x6   :  { %26 = sfence }
   0x7   :  { %s1459_s13 = smov 0   ;;  %s1461_s14 = smov 0  }
   0x8   :  { %s1463_s15 = smov 0  }
   0x9 LB: > { %s51_s0 = sadd.s32 1, %s1394_s14  ;;  %p1207_p0 = scmp.ge.s32.totalorder %s1398_s15, 1  ;;  %s1398_s15 = sphi %s1463_s15, %s32_s15   ;;  %s1394_s14 = sphi %s1461_s14, %s1787_s14   ;;  %s1390_s13 = sphi %s1459_s13, %s1786_s13  }
   0xa   : > { %p53_p1 = scmp.ge.s32.totalorder %s51_s0, 2  ;;  %p333_p2 = scmp.lt.s32.totalorder %s1398_s15, 3 }
   0xc   : > { %s1789_s0 = smov (%p53_p1, %s51_s0), 0  ;;  %p334_p3 = pnand %p1207_p0, %p333_p2 }
   0xd   : > { %p422_p4 = scmp.lt.s32.totalorder (!%p334_p3), %s1390_s13, 1  ;;  %s1701_s19 = sld [smem:[#allocation4 + %s1390_s13]] (!%p334_p3) }
   0xe   : > { %337 = sbr.rel (%p334_p3) target bundleno = 496 (0x1f0), region = 36 }
  0x13   : > { %s1481_s1 = scalar_select %p422_p4, %s1390_s13, 1  ;;  %v502_v0 = vlaneseq  ;;  %v1406_v14 = vmov 0.0   ;;  %vm557_vm2 = vcmask 130048  }
  0x14   : > { %p1251_p5 = scmp.le.s32.totalorder %s1701_s19, 0 }
  0x15   : > { %s1258_s16 = smul.u32 160, %s1481_s1  ;;  %s1256_s17 = sshll.u32 %s1481_s1, 4  ;;  %v1513_v12 = vshrl.u32 %v502_v0, 7  ;;  %v1515_v13 = vand.u32 127, %v502_v0 }
  0x16   : > { %s1259_s18 = smul.u32 48, %s1481_s1  ;;  %s471_s21 = scalar_lea.vmem %s1773_s5, %s1256_s17 }
  0x17   : > { %s1494_s24 = scalar_lea.vmem %s1770_s2, %s1258_s16  ;;  %v1496_v1 = vld [vmem:[%s471_s21] sm:$0xff]  ;;  %v1498_v2 = vld [vmem:[%s471_s21 + $0x8] sm:$0xff]  ;;  %s458_s30 = scalar_lea.vmem %s1772_s4, %s1256_s17  ;;  %v504_v36 = vadd.s32 8, %v1513_v12  ;;  %v516_v46 = vcvt.s32.f32 %v1515_v13  ;;  %v509_v55 = vcvt.s32.f32 %v1513_v12 }
  0x18   : > { %s445_s27 = scalar_lea.vmem %s1771_s3, %s1259_s18  ;;  %vm520_vm0 = vcmp.gt.s32.totalorder %v1496_v1, 0  ;;  %v1219_v3 = vld [vmem:[%s1494_s24 + $0x70] sm:$0xff]  ;;  %v1220_v4 = vld [vmem:[%s1494_s24 + $0x78] sm:$0xff]  ;;  %v1221_v5 = vld [vmem:[%s1494_s24 + $0x80] sm:$0xff]  ;;  %vm521_vm1 = vcmp.gt.s32.totalorder %v1498_v2, 0  ;;  %s1596_s11 = scalar_lea.vmem %s1774_s6, %s1259_s18 }
  0x19   : > { %v1222_v6 = vld [vmem:[%s1494_s24 + $0x88] sm:$0xff]  ;;  %v1223_v7 = vld [vmem:[%s1494_s24 + $0x90] sm:$0xff]  ;;  %v1224_v8 = vld [vmem:[%s1494_s24 + $0x98] sm:$0xff]  ;;  %v1518_v15 = vsel %vm520_vm0, 1.0, %v1406_v14  ;;  %v1523_v22 = vsel %vm521_vm1, 1.0, %v1406_v14  ;;  %v510_v58 = vcvt.s32.f32 %v504_v36  ;;  %s1215_s12 = sshll.u32 %s1481_s1, 3 }
  0x1a   : > { %v533_v9 = vld [vmem:[%s445_s27] sm:$0xff]  ;;  %v534_v10 = vld [vmem:[%s445_s27 + $0x8] sm:$0xff]  ;;  %v535_v11 = vld [vmem:[%s445_s27 + $0x10] sm:$0xff]  ;;  %v1566_v62 = vmul.f32 0.0009770396, %v516_v46  ;;  %s1696_s18 = scalar_lea.vmem %s1776_s8, %s1215_s12  ;;  %s1709_s28 = smov (!%p1251_p5), 0  }
  0x1b   : > { %v536_v16 = vld [vmem:[%s445_s27 + $0x18] sm:$0xff]  ;;  %v537_v17 = vld [vmem:[%s445_s27 + $0x20] sm:$0xff]  ;;  %v538_v18 = vld [vmem:[%s445_s27 + $0x28] sm:$0xff]  ;;  %v539_v19 = vsub.f32 %v533_v9, %v1219_v3  ;;  %v540_v20 = vsub.f32 %v534_v10, %v1220_v4  ;;  %v541_v21 = vsub.f32 %v535_v11, %v1221_v5  ;;  %807 = vst [vmem:[%s1696_s18] sm:$0xff] %v1406_v14  ;;  %s489_s27 = scalar_lea.vmem %s1775_s7, %s1215_s12 }
  0x1c   : > { %v542_v23 = vsub.f32 %v536_v16, %v1222_v6  ;;  %v543_v24 = vsub.f32 %v537_v17, %v1223_v7  ;;  %v544_v25 = vsub.f32 %v538_v18, %v1224_v8  ;;  %v1526_v26 = vld [vmem:[%s1494_s24 + $0x20] sm:$0xff]  ;;  %v1529_v27 = vld [vmem:[%s1494_s24 + $0x28] sm:$0xff]  ;;  %v1532_v28 = vld [vmem:[%s1494_s24 + $0x30] sm:$0xff] }
  0x1d   : > { %v545_v29 = vmul.f32 %v539_v19, %v539_v19  ;;  %v546_v30 = vmul.f32 %v540_v20, %v540_v20  ;;  %v547_v31 = vmul.f32 %v541_v21, %v541_v21  ;;  %v1535_v32 = vld [vmem:[%s1494_s24 + $0x38] sm:$0xff]  ;;  %v1225_v37 = vld [vmem:[%s1494_s24 + $0x40] sm:$0xff]  ;;  %v1226_v38 = vld [vmem:[%s1494_s24 + $0x48] sm:$0xff]  ;;  %v1585_v20 = vmul.f32 0.0009775171, %v509_v55 }
  0x1e   : > { %v548_v33 = vmul.f32 %v542_v23, %v542_v23  ;;  %v549_v34 = vmul.f32 %v543_v24, %v543_v24  ;;  %v550_v35 = vmul.f32 %v544_v25, %v544_v25  ;;  %v1227_v42 = vmul.f32 -1.442695, %v1225_v37  ;;  %v1550_v45 = vld [vmem:[%s458_s30] sm:$0xff]  ;;  %v1558_v54 = vld [vmem:[%s458_s30 + $0x8] sm:$0xff]  ;;  %v1229_v59 = vld [vmem:[%s1494_s24 + $0x10] sm:$0xff] }
  0x1f   : > { %v551_v39 = vmul.f32 %v1518_v15, %v545_v29  ;;  %v552_v40 = vmul.f32 %v1523_v22, %v546_v30  ;;  %v553_v41 = vmul.f32 %v1518_v15, %v547_v31  ;;  %v1228_v47 = vmul.f32 -1.442695, %v1226_v38  ;;  %v631_v51 = vld [vmem:[%s1494_s24] sm:$0xff]  ;;  %v632_v56 = vld [vmem:[%s1494_s24 + $0x8] sm:$0xff]  ;;  %v1230_v63 = vld [vmem:[%s1494_s24 + $0x18] sm:$0xff] }
  0x20   : > { %v554_v43 = vmul.f32 %v1523_v22, %v548_v33  ;;  %v555_v44 = vmul.f32 %v1518_v15, %v549_v34  ;;  %1318 = vpow2.f32 %v1227_v42  ;;  %v556_v52 = vmul.f32 %v1523_v22, %v550_v35  ;;  %v1243_v17 = vld [vmem:[%s1494_s24 + $0x60] sm:$0xff]  ;;  %v1245_v18 = vld [vmem:[%s1494_s24 + $0x50] sm:$0xff]  ;;  %v1244_v36 = vld [vmem:[%s1494_s24 + $0x68] sm:$0xff] }
  0x21   : > { %v558_v48 = vsel %vm557_vm2, %v551_v39, 0.0  ;;  %v559_v49 = vsel %vm557_vm2, %v552_v40, 0.0  ;;  %v561_v50 = vsel %vm557_vm2, %v553_v41, 0.0  ;;  %1320 = vpow2.f32 %v1228_v47  ;;  %v1246_v37 = vld [vmem:[%s1494_s24 + $0x58] sm:$0xff] }
  0x22   : > { %v560_v53 = vadd.f32 %v559_v49, %v558_v48  ;;  %v563_v57 = vsel %vm557_vm2, %v554_v43, 0.0  ;;  %vm680_vm3 = vcmp.eq.s32.totalorder %v1550_v45, 1  ;;  %v565_v61 = vsel %vm557_vm2, %v555_v44, 0.0 }
  0x23   : > { %1322 = vtanh.f32 %v631_v51  ;;  %vm681_vm4 = vcmp.eq.s32.totalorder %v1558_v54, 1  ;;  %v1239_v0 = vsel %vm680_vm3, 1.0, %v1406_v14  ;;  %vm674_vm5 = vcmp.lt.s32.totalorder %v1550_v45, 2 }
  0x24   : > { %v562_v60 = vadd.f32 %v561_v50, %v560_v53  ;;  %1324 = vtanh.f32 %v632_v56  ;;  %v567_v4 = vsel %vm557_vm2, %v556_v52, 0.0  ;;  %v1240_v5 = vsel %vm681_vm4, 1.0, %v1406_v14 }
  0x25   : > { %1326 = vtanh.f32 %v1229_v59  ;;  %v686_v7 = vmul.f32 2.0, %v1239_v0  ;;  %vm675_vm6 = vcmp.lt.s32.totalorder %v1558_v54, 2  ;;  %v1576_v8 = vsel %vm674_vm5, 1.0, %v1406_v14 }
  0x26   : > { %v564_v3 = vadd.f32 %v563_v57, %v562_v60  ;;  %v1319_v6 = vpop.eup %1318  ;;  %1328 = vtanh.f32 %v1230_v63  ;;  %v687_v11 = vmul.f32 2.0, %v1240_v5  ;;  %v1581_v16 = vsel %vm675_vm6, 1.0, %v1406_v14 }
  0x27   : > { %v1578_v10 = vadd.f32 1.0, %v1319_v6  ;;  %v1321_v19 = vpop.eup %1320  ;;  %v792_v21 = vsel %vm557_vm2, %v1576_v8, 0.0  ;;  %v793_v23 = vsel %vm557_vm2, %v1581_v16, 0.0  ;;  %v1598_v29 = vmul.f32 0.0009775171, %v510_v58 }
  0x28   : > { %v566_v9 = vadd.f32 %v565_v61, %v564_v3  ;;  %v1600_v30 = vadd.f32 1.0, %v1321_v19  ;;  %v1241_v34 = vadd.f32 -1.0, %v686_v7  ;;  %v794_v35 = vadd.f32 %v793_v23, %v792_v21 }
  0x29   : > { %v1323_v24 = vpop.eup %1322  ;;  %1330 = vrcp.f32 %v1578_v10  ;;  %v696_v38 = vsub.f32 %v1243_v17, %v1245_v18  ;;  %v1242_v40 = vadd.f32 -1.0, %v687_v11  ;;  %v578_v42 = vsel %vm557_vm2, %v1518_v15, 0.0 }
  0x2a   : > { %v568_v25 = vadd.f32 %v567_v4, %v566_v9  ;;  %v1325_v31 = vpop.eup %1324  ;;  %v635_v33 = vadd.f32 %v1323_v24, %v1566_v62  ;;  %1332 = vrcp.f32 %v1600_v30  ;;  %v579_v43 = vsel %vm557_vm2, %v1523_v22, 0.0  ;;  %795 = vadd.xlane.f32.xlu2 %v794_v35 }
  0x2b   : > { %v1327_v39 = vpop.eup %1326  ;;  %v636_v44 = vadd.f32 %v1325_v31, %v1566_v62  ;;  %v697_v48 = vsub.f32 %v1244_v36, %v1246_v37  ;;  %v1618_v49 = vmul.f32 %v1241_v34, %v696_v38  ;;  %v580_v51 = vadd.f32 %v579_v43, %v578_v42 }
  0x2c   : > { %569 = vadd.xlane.f32.xlu0 %v568_v25  ;;  %v1329_v41 = vpop.eup %1328  ;;  %v642_v46 = vadd.f32 %v1327_v39, %v1585_v20  ;;  %644 = vst.msk [vmem:[%s1596_s11] sm:$0xff] %vm557_vm2, %v635_v33  ;;  %vm652_vm7 = vcmp.eq.s32.totalorder %v1550_v45, 0  ;;  %vm606_vm8 = vweird.f32 %v1578_v10  ;;  %v610_v55 = vand.u32 2147483647, %v1578_v10 }
  0x2d   : > { %v643_v47 = vadd.f32 %v1329_v41, %v1598_v29  ;;  %645 = vst.msk [vmem:[%s1596_s11 + $0x8] sm:$0xff] %vm557_vm2, %v636_v44  ;;  %v1622_v15 = vmul.f32 %v1242_v40, %v697_v48  ;;  %v700_v52 = vand.u32 2147483647, %v1618_v49  ;;  %v612_v56 = vand.u32 2147483648, %v1578_v10 }
  0x2e   : > { %1231 = vst.msk [vmem:[%s1596_s11 + $0x10] sm:$0xff] %vm557_vm2, %v642_v46  ;;  %vm621_vm10 = vweird.f32 %v1600_v30  ;;  %v625_v61 = vand.u32 2147483647, %v1600_v30  ;;  %v627_v63 = vand.u32 2147483648, %v1600_v30  ;;  %vm653_vm13 = vcmp.eq.s32.totalorder %v1558_v54, 0 }
  0x2f   : > { %v1331_v50 = vpop.eup %1330  ;;  %1232 = vst.msk [vmem:[%s1596_s11 + $0x18] sm:$0xff] %vm557_vm2, %v643_v47  ;;  %v701_v57 = vand.u32 2147483647, %v1622_v15  ;;  %v702_v60 = vsub.f32 0.0, %v700_v52  ;;  %v613_v7 = vor.u32 1.1754944e-38, %v612_v56  ;;  %vm611_vm14 = vcmp.eq.f32.partialorder %v610_v55, 8.507059e+37 }
  0x30   : > { %v602_v22 = vmul.f32 %v1331_v50, %v1578_v10  ;;  %v1333_v53 = vpop.eup %1332  ;;  %vm607_vm9 = vweird.f32 %v1331_v50  ;;  %v628_v18 = vor.u32 1.1754944e-38, %v627_v63  ;;  %v1235_v10 = vsel %vm652_vm7, 1.0, %v1406_v14 }
  0x31   : > { %v617_v59 = vmul.f32 %v1333_v53, %v1600_v30  ;;  %v703_v0 = vsub.f32 0.0, %v701_v57  ;;  %vm622_vm11 = vweird.f32 %v1333_v53  ;;  %v704_v5 = vmul.f32 1.442695, %v702_v60  ;;  %vm1639_vm12 = vmor %vm606_vm8, %vm607_vm9 }
  0x32   : > { %v603_v58 = vsub.f32 1.0, %v602_v22  ;;  %vm623_vm15 = vmor %vm621_vm10, %vm622_vm11  ;;  %vm626_vm0 = vcmp.eq.f32.partialorder %v625_v61, 8.507059e+37  ;;  %v1236_v23 = vsel %vm653_vm13, 1.0, %v1406_v14  ;;  %v708_v46 = vsub.f32 0.0, %v1618_v49 }
  0x33   : > { %v618_v4 = vsub.f32 1.0, %v617_v59  ;;  %v706_v9 = vmul.f32 1.442695, %v703_v0  ;;  %1334 = vpow2.f32 %v704_v5  ;;  %v709_v47 = vsub.f32 0.0, %v1622_v15 }
  0x34   : > { %581 = vadd.xlane.f32.xlu0 %v580_v51  ;;  %v604_v3 = vmul.f32 %v1331_v50, %v603_v58  ;;  %vm734_vm3 = vcmp.ge.f32.partialorder %v1618_v49, 0.0  ;;  %vm735_vm4 = vcmp.ge.f32.partialorder %v1622_v15, 0.0  ;;  %v710_v6 = vmax.f32 %v708_v46, 0.0 }
  0x35   : > { %v619_v17 = vmul.f32 %v1333_v53, %v618_v4  ;;  %1336 = vpow2.f32 %v706_v9 }
  0x36   : > { %v605_v11 = vadd.f32 %v1331_v50, %v604_v3 }
  0x37   : > { %v620_v54 = vadd.f32 %v1333_v53, %v619_v17 }
  0x38   : > { %v609_v19 = vsel %vm1639_vm12, %v1331_v50, %v605_v11 }
  0x39   : > { %v614_v21 = vsel %vm611_vm14, %v613_v7, %v609_v19  ;;  %v624_v24 = vsel %vm623_vm15, %v1333_v53, %v620_v54  ;;  %v1335_v31 = vpop.eup %1334  ;;  %vm814_vm14 = vcmask 1040384   ;;  %vm816_vm15 = vcmask 1041408  }
  0x3a   : > { %v658_v25 = vmul.f32 %v1235_v10, %v614_v21  ;;  %1233 = vst.msk [vmem:[%s1596_s11 + $0x20] sm:$0xff] %vm557_vm2, %v614_v21  ;;  %v629_v30 = vsel %vm626_vm0, %v628_v18, %v624_v24  ;;  %v712_v35 = vadd.f32 1.0, %v1335_v31  ;;  %v715_v41 = vmul.f32 -0.5, %v1335_v31 }
  0x3b   : > { %1234 = vst.msk [vmem:[%s1596_s11 + $0x28] sm:$0xff] %vm557_vm2, %v629_v30  ;;  %v659_v33 = vmul.f32 %v1236_v23, %v629_v30  ;;  %v1337_v34 = vpop.eup %1336  ;;  %v718_v42 = vand.u32 2147483647, %v1335_v31  ;;  %v711_v24 = vmax.f32 %v709_v47, 0.0  ;;  %vm818_vm0 = vcmask 1042432  }
  0x3c   : > { %v660_v45 = vmul.f32 %v658_v25, %v614_v21  ;;  %v721_v38 = vadd.f32 1.0, %v1337_v34  ;;  %1338 = vrcp.f32 %v712_v35  ;;  %v724_v43 = vmul.f32 -0.5, %v1337_v34 }
  0x3d   : > { %v661_v36 = vmul.f32 %v659_v33, %v629_v30  ;;  %1340 = vlog2.f32 %v712_v35  ;;  %v716_v48 = vadd.f32 1.0, %v715_v41  ;;  %vm1660_vm1 = vcmp.lt.f32.partialorder %v718_v42, 0.0004427343 }
  0x3e   : > { %v662_v37 = vsel %vm557_vm2, %v660_v45, 0.0  ;;  %1342 = vrcp.f32 %v721_v38  ;;  %v725_v53 = vadd.f32 1.0, %v724_v43  ;;  %v727_v55 = vand.u32 2147483647, %v1337_v34 }
  0x3f   : > { %v663_v39 = vsel %vm557_vm2, %v661_v36, 0.0  ;;  %1344 = vlog2.f32 %v721_v38  ;;  %vm745_vm5 = vweird.f32 %v712_v35  ;;  %v751_v56 = vand.u32 2147483648, %v712_v35 }
  0x40   : > { %v664_v40 = vadd.f32 %v663_v39, %v662_v37  ;;  %v749_v59 = vand.u32 2147483647, %v712_v35  ;;  %v717_v63 = vmul.f32 %v1335_v31, %v716_v48  ;;  %vm760_vm7 = vweird.f32 %v721_v38 }
  0x41   : > { %v766_v0 = vand.u32 2147483648, %v721_v38  ;;  %v764_v5 = vand.u32 2147483647, %v721_v38  ;;  %v726_v9 = vmul.f32 %v1337_v34, %v725_v53  ;;  %v752_v17 = vor.u32 1.1754944e-38, %v751_v56 }
  0x42   : > { %665 = vadd.xlane.f32.xlu1 %v664_v40  ;;  %v1339_v44 = vpop.eup %1338  ;;  %vm1671_vm10 = vcmp.lt.f32.partialorder %v727_v55, 0.0004427343  ;;  %vm750_vm11 = vcmp.eq.f32.partialorder %v749_v59, 8.507059e+37  ;;  %v736_v21 = vsel %vm734_vm3, 1.0, %v1335_v31  ;;  %v737_v45 = vsel %vm735_vm4, 1.0, %v1337_v34 }
  0x43   : > { %v1341_v50 = vpop.eup %1340  ;;  %v741_v22 = vmul.f32 %v1339_v44, %v712_v35  ;;  %vm746_vm6 = vweird.f32 %v1339_v44  ;;  %v767_v23 = vor.u32 1.1754944e-38, %v766_v0  ;;  %vm765_vm13 = vcmp.eq.f32.partialorder %v764_v5, 8.507059e+37 }
  0x44   : > { %v1343_v52 = vpop.eup %1342  ;;  %v714_v61 = vmul.f32 0.6931472, %v1341_v50  ;;  %vm1667_vm9 = vmor %vm745_vm5, %vm746_vm6  ;;  %vm822_vm3 = vcmask 1044480   ;;  %vm824_vm4 = vcmask 1045504   ;;  %vm826_vm5 = vcmask 1046528  }
  0x45   : > { %v1345_v57 = vpop.eup %1344  ;;  %v742_v58 = vsub.f32 1.0, %v741_v22  ;;  %v756_v60 = vmul.f32 %v1343_v52, %v721_v38  ;;  %vm761_vm8 = vweird.f32 %v1343_v52 }
  0x46   : > { %v723_v7 = vmul.f32 0.6931472, %v1345_v57  ;;  %v720_v54 = vsel %vm1660_vm1, %v717_v63, %v714_v61  ;;  %vm762_vm12 = vmor %vm760_vm7, %vm761_vm8  ;;  %vm820_vm1 = vcmask 1043456  }
  0x47   : > { %v743_v3 = vmul.f32 %v1339_v44, %v742_v58  ;;  %v757_v4 = vsub.f32 1.0, %v756_v60  ;;  %v730_v36 = vadd.f32 %v720_v54, %v710_v6 }
  0x48   : > { %v729_v33 = vsel %vm1671_vm10, %v726_v9, %v723_v7 }
  0x49   : > { %v744_v10 = vadd.f32 %v1339_v44, %v743_v3  ;;  %v758_v19 = vmul.f32 %v1343_v52, %v757_v4  ;;  %v731_v38 = vadd.f32 %v729_v33, %v711_v24  ;;  %v732_v41 = vsub.f32 0.0, %v730_v36 }
  0x4b   : > { %v748_v25 = vsel %vm1667_vm9, %v1339_v44, %v744_v10  ;;  %v759_v30 = vadd.f32 %v1343_v52, %v758_v19  ;;  %v733_v44 = vsub.f32 0.0, %v731_v38 }
  0x4c   : > { %v753_v35 = vsel %vm750_vm11, %v752_v17, %v748_v25 }
  0x4d   : > { %v754_v37 = vmul.f32 %v753_v35, %v736_v21  ;;  %v763_v49 = vsel %vm762_vm12, %v1343_v52, %v759_v30 }
  0x4e   : > { %v768_v31 = vsel %vm765_vm13, %v767_v23, %v763_v49 }
  0x4f   : > { %v769_v39 = vmul.f32 %v768_v31, %v737_v45  ;;  %v770_v40 = vsub.f32 1.0, %v754_v37 }
  0x51   : > { %v771_v42 = vsub.f32 1.0, %v769_v39  ;;  %v772_v43 = vmul.f32 %v770_v40, %v770_v40 }
  0x53   : > { %v773_v46 = vmul.f32 %v771_v42, %v771_v42  ;;  %v774_v47 = vsub.f32 0.0, %v772_v43 }
  0x55   : > { %v775_v48 = vsub.f32 0.0, %v773_v46  ;;  %v776_v15 = vmul.f32 %v774_v47, %v732_v41 }
  0x57   : > { %v777_v34 = vmul.f32 %v775_v48, %v733_v44  ;;  %v778_v50 = vmul.f32 %v1576_v8, %v776_v15 }
  0x59   : > { %v779_v51 = vmul.f32 %v1581_v16, %v777_v34  ;;  %v780_v22 = vsel %vm557_vm2, %v778_v50, 0.0 }
  0x5b   : > { %v781_v52 = vsel %vm557_vm2, %v779_v51, 0.0 }
  0x5c   : > { %v782_v53 = vadd.f32 %v781_v52, %v780_v22 }
  0x5e   : > { %783 = vadd.xlane.f32.xlu1 %v782_v53 }
  0x9d   : > { %v796_v10 = vpop.xlane.xlu2 %795 }
  0x9e   : > { %v797_v19 = vrot.slane %v796_v10, 4 }
  0x9f   : > { %v570_v8 = vpop.xlane.xlu0 %569 }
  0xa0   : > { %v571_v16 = vrot.slane %v570_v8, 4  ;;  %v798_v54 = vadd.f32 %v797_v19, %v796_v10 }
  0xa2   : > { %v572_v55 = vadd.f32 %v571_v16, %v570_v8  ;;  %v799_v21 = vrot.slane %v798_v54, 2 }
  0xa4   : > { %v573_v56 = vrot.slane %v572_v55, 2  ;;  %v800_v30 = vadd.f32 %v799_v21, %v798_v54 }
  0xa6   : > { %v574_v57 = vadd.f32 %v573_v56, %v572_v55  ;;  %v801_v35 = vrot.slane %v800_v30, 1 }
  0xa7   : > { %v582_v58 = vpop.xlane.xlu0 %581 }
  0xa8   : > { %v583_v59 = vrot.slane %v582_v58, 4  ;;  %v575_v60 = vrot.slane %v574_v57, 1  ;;  %v802_v49 = vadd.f32 %v801_v35, %v800_v30 }
  0xaa   : > { %v584_v61 = vadd.f32 %v583_v59, %v582_v58  ;;  %v576_v63 = vadd.f32 %v575_v60, %v574_v57 }
  0xac   : > { %v585_v0 = vrot.slane %v584_v61, 2  ;;  %1260 = vpush %v576_v63 }
  0xae   : > { %v586_v3 = vadd.f32 %v585_v0, %v584_v61 }
  0xb0   : > { %v587_v4 = vrot.slane %v586_v3, 1 }
  0xb2   : > { %v588_v5 = vadd.f32 %v587_v4, %v586_v3 }
  0xb4   : > { %1262 = vpush %v588_v5 }
  0xb5   : > { %v666_v6 = vpop.xlane.xlu1 %665 }
  0xb6   : > { %v667_v14 = vrot.slane %v666_v6, 4 }
  0xb8   : > { %v668_v7 = vadd.f32 %v667_v14, %v666_v6 }
  0xba   : > { %v669_v9 = vrot.slane %v668_v7, 2 }
  0xbc   : > { %v670_v11 = vadd.f32 %v669_v9, %v668_v7 }
  0xbe   : > { %v671_v17 = vrot.slane %v670_v11, 1 }
  0xc0   : > { %v672_v18 = vadd.f32 %v671_v17, %v670_v11 }
  0xc2   : > { %1264 = vpush %v672_v18 }
  0xd1   : > { %v784_v23 = vpop.xlane.xlu1 %783 }
  0xd2   : > { %v785_v24 = vrot.slane %v784_v23, 4 }
  0xd4   : > { %v786_v25 = vadd.f32 %v785_v24, %v784_v23 }
  0xd6   : > { %v787_v33 = vrot.slane %v786_v25, 2 }
  0xd8   : > { %v788_v45 = vadd.f32 %v787_v33, %v786_v25 }
  0xda   : > { %v789_v36 = vrot.slane %v788_v45, 1 }
  0xdc   : > { %v790_v37 = vadd.f32 %v789_v36, %v788_v45 }
  0xdd   : > { %s1261_s20 = spop %1260 }
  0xde   : > { %1266 = vpush %v790_v37  ;;  %v809_v31 = vstv %s1261_s20 }
  0xdf   : > { %1268 = vpush %v802_v49 }
  0xe5   : > { %s1263_s21 = spop %1262 }
  0xe6   : > { %v810_v38 = vstv %s1263_s21 }
  0xe7   : > { %v815_v39 = vsel %vm814_vm14, %v809_v31, %v810_v38 }
  0xf3   : > { %s1265_s22 = spop %1264 }
  0xf4   : > { %v811_v40 = vstv %s1265_s22 }
  0xf5   : > { %v817_v41 = vsel %vm816_vm15, %v815_v39, %v811_v40 }
 0x10f   : > { %s1267_s23 = spop %1266 }
 0x110   : > { %v812_v42 = vstv %s1267_s23  ;;  %s1269_s24 = spop %1268 }
 0x111   : > { %v819_v43 = vsel %vm818_vm0, %v817_v41, %v812_v42  ;;  %v813_v44 = vstv %s1269_s24 }
 0x112   : > { %v821_v46 = vsel %vm820_vm1, %v819_v43, %v813_v44  ;;  %1132 = sbr.rel (%p1251_p5) target bundleno = 496 (0x1f0), region = 113 }
 0x113   : > { %v823_v47 = vsel %vm822_vm3, %v821_v46, 0.0 }
 0x114   : > { %v825_v48 = vsel %vm824_vm4, %v823_v47, 0.0 }
 0x115   : > { %v827_v15 = vsel %vm826_vm5, %v825_v48, 0.0 }
 0x116   : > { %829 = vst [vmem:[%s489_s27] sm:$0xff] %v827_v15 }
 0x117 LB: >> { %s843_s29 = smul.u32 25, %s1390_s13  ;;  %v921_v34 = vmul.f32 %v1526_v26, %v1526_v26  ;;  %v923_v50 = vmul.f32 %v1532_v28, %v1532_v28  ;;  %v922_v51 = vmul.f32 %v1529_v27, %v1529_v27  ;;  %v924_v22 = vmul.f32 %v1535_v32, %v1535_v32  ;;  %s1402_s28 = sphi %s1709_s28, %s840_s28  }
 0x118   : >> { %v1407_v8 = vmov 0.0   ;;  %vm941_vm8 = vcmp.eq.s32.totalorder %v1513_v12, 0  ;;  %vm944_vm9 = vcmp.eq.s32.totalorder %v1513_v12, 1  ;;  %vm948_vm10 = vcmp.eq.s32.totalorder %v1513_v12, 2 }
 0x119   : >> { %s844_s1 = sadd.s32 %s1402_s28, %s843_s29  ;;  %v925_v53 = vadd.f32 %v923_v50, %v921_v34  ;;  %v926_v56 = vadd.f32 %v924_v22, %v922_v51  ;;  %vm952_vm11 = vcmp.eq.s32.totalorder %v1513_v12, 3  ;;  %vm956_vm12 = vcmp.eq.s32.totalorder %v1513_v12, 4 }
 0x11a   : >> { %s845_s30 = sld [smem:[#allocation3 + %s844_s1]]  ;;  %vm960_vm13 = vcmp.eq.s32.totalorder %v1513_v12, 5 }
 0x120   : >> { %v846_v52 = vstv %s845_s30 }
 0x121   : >> { %vm847_vm6 = vcmp.eq.s32.totalorder %v1496_v1, %v846_v52  ;;  %vm848_vm7 = vcmp.eq.s32.totalorder %v1498_v2, %v846_v52 }
 0x122   : >> { %v1252_v16 = vsel %vm847_vm6, 1.0, %v1407_v8  ;;  %v1253_v55 = vsel %vm848_vm7, 1.0, %v1407_v8 }
 0x123   : >> { %v853_v57 = vsel %vm557_vm2, %v1252_v16, 0.0  ;;  %v854_v58 = vsel %vm557_vm2, %v1253_v55, 0.0  ;;  %v907_v59 = vmul.f32 %v1252_v16, %v1532_v28  ;;  %v908_v60 = vmul.f32 %v1253_v55, %v1535_v32 }
 0x124   : >> { %v855_v61 = vadd.f32 %v854_v58, %v853_v57  ;;  %v879_v63 = vmul.f32 %v1252_v16, %v1585_v20  ;;  %v880_v0 = vmul.f32 %v1253_v55, %v1598_v29  ;;  %v865_v3 = vmul.f32 %v1252_v16, %v1566_v62 }
 0x125   : >> { %v909_v4 = vsel %vm557_vm2, %v907_v59, 0.0  ;;  %v910_v5 = vsel %vm557_vm2, %v908_v60, 0.0  ;;  %v866_v6 = vmul.f32 %v1253_v55, %v1566_v62  ;;  %v927_v14 = vmul.f32 %v1252_v16, %v925_v53 }
 0x126   : >> { %856 = vadd.xlane.f32.xlu0 %v855_v61  ;;  %v911_v7 = vadd.f32 %v910_v5, %v909_v4  ;;  %v881_v9 = vsel %vm557_vm2, %v879_v63, 0.0  ;;  %v882_v11 = vsel %vm557_vm2, %v880_v0, 0.0  ;;  %v867_v18 = vsel %vm557_vm2, %v865_v3, 0.0 }
 0x127   : >> { %v883_v17 = vadd.f32 %v882_v11, %v881_v9  ;;  %v868_v10 = vsel %vm557_vm2, %v866_v6, 0.0  ;;  %v928_v19 = vmul.f32 %v1253_v55, %v926_v56  ;;  %v893_v54 = vmul.f32 %v1252_v16, %v1526_v26 }
 0x128   : >> { %912 = vadd.xlane.f32.xlu2 %v911_v7  ;;  %v894_v21 = vmul.f32 %v1253_v55, %v1529_v27  ;;  %v929_v23 = vsel %vm557_vm2, %v927_v14, 0.0  ;;  %v869_v25 = vadd.f32 %v868_v10, %v867_v18 }
 0x129   : >> { %884 = vadd.xlane.f32.xlu1 %v883_v17  ;;  %v930_v24 = vsel %vm557_vm2, %v928_v19, 0.0  ;;  %v895_v30 = vsel %vm557_vm2, %v893_v54, 0.0 }
 0x12a   : >> { %v896_v33 = vsel %vm557_vm2, %v894_v21, 0.0  ;;  %v931_v45 = vadd.f32 %v930_v24, %v929_v23 }
 0x12b   : >> { %v897_v35 = vadd.f32 %v896_v33, %v895_v30 }
 0x12e   : >> { %870 = vadd.xlane.f32.xlu0 %v869_v25 }
 0x130   : >> { %932 = vadd.xlane.f32.xlu2 %v931_v45 }
 0x131   : >> { %898 = vadd.xlane.f32.xlu1 %v897_v35 }
 0x199   : >> { %v857_v36 = vpop.xlane.xlu0 %856 }
 0x19a   : >> { %v858_v37 = vrot.slane %v857_v36, 4 }
 0x19b   : >> { %v913_v49 = vpop.xlane.xlu2 %912 }
 0x19c   : >> { %v859_v31 = vadd.f32 %v858_v37, %v857_v36  ;;  %v914_v38 = vrot.slane %v913_v49, 4  ;;  %v885_v39 = vpop.xlane.xlu1 %884 }
 0x19d   : >> { %v886_v40 = vrot.slane %v885_v39, 4 }
 0x19e   : >> { %v860_v41 = vrot.slane %v859_v31, 2  ;;  %v915_v43 = vadd.f32 %v914_v38, %v913_v49  ;;  %v965_v49 = vstv %s1402_s28  ;;  %s840_s28 = sadd.s32 1, %s1402_s28  }
 0x19f   : >> { %v887_v42 = vadd.f32 %v886_v40, %v885_v39  ;;  %vm966_vm14 = vcmp.eq.s32.totalorder %v1515_v13, %v965_v49  ;;  %p839_p6 = scmp.ge.s32.totalorder %s840_s28, %s1701_s19 }
 0x1a0   : >> { %v861_v44 = vadd.f32 %v860_v41, %v859_v31  ;;  %v916_v50 = vrot.slane %v915_v43, 2  ;;  %v964_v41 = vld [vmem:[%s1696_s18] sm:$0xff] }
 0x1a1   : >> { %v888_v46 = vrot.slane %v887_v42, 2  ;;  %v871_v47 = vpop.xlane.xlu0 %870 }
 0x1a2   : >> { %v872_v48 = vrot.slane %v871_v47, 4  ;;  %v862_v15 = vrot.slane %v861_v44, 1  ;;  %v917_v60 = vadd.f32 %v916_v50, %v915_v43 }
 0x1a3   : >> { %v933_v34 = vpop.xlane.xlu2 %932  ;;  %v889_v16 = vadd.f32 %v888_v46, %v887_v42 }
 0x1a4   : >> { %v873_v51 = vadd.f32 %v872_v48, %v871_v47  ;;  %v934_v22 = vrot.slane %v933_v34, 4  ;;  %v899_v52 = vpop.xlane.xlu1 %898  ;;  %v863_v53 = vadd.f32 %v862_v15, %v861_v44  ;;  %v918_v6 = vrot.slane %v917_v60, 1 }
 0x1a5   : >> { %v900_v8 = vrot.slane %v899_v52, 4  ;;  %v890_v63 = vrot.slane %v889_v16, 1 }
 0x1a6   : >> { %v874_v55 = vrot.slane %v873_v51, 2  ;;  %v935_v56 = vadd.f32 %v934_v22, %v933_v34  ;;  %1270 = vpush %v863_v53  ;;  %v919_v18 = vadd.f32 %v918_v6, %v917_v60 }
 0x1a7   : >> { %v901_v57 = vadd.f32 %v900_v8, %v899_v52  ;;  %v891_v7 = vadd.f32 %v890_v63, %v889_v16 }
 0x1a8   : >> { %v875_v58 = vadd.f32 %v874_v55, %v873_v51  ;;  %v936_v59 = vrot.slane %v935_v56, 2 }
 0x1a9   : >> { %v902_v61 = vrot.slane %v901_v57, 2 }
 0x1aa   : >> { %v937_v0 = vadd.f32 %v936_v59, %v935_v56  ;;  %v876_v3 = vrot.slane %v875_v58, 1 }
 0x1ab   : >> { %v903_v4 = vadd.f32 %v902_v61, %v901_v57 }
 0x1ac   : >> { %v877_v5 = vadd.f32 %v876_v3, %v875_v58  ;;  %v938_v14 = vrot.slane %v937_v0, 1 }
 0x1ad   : >> { %v904_v9 = vrot.slane %v903_v4, 1 }
 0x1ae   : >> { %1272 = vpush %v877_v5  ;;  %v939_v17 = vadd.f32 %v938_v14, %v937_v0 }
 0x1af   : >> { %1274 = vpush %v891_v7  ;;  %v905_v11 = vadd.f32 %v904_v9, %v903_v4 }
 0x1b1   : >> { %1276 = vpush %v905_v11 }
 0x1b2   : >> { %1278 = vpush %v919_v18 }
 0x1b3   : >> { %1280 = vpush %v939_v17 }
 0x1d7   : >> { %s1271_s9 = spop %1270 }
 0x1d8   : >> { %v942_v10 = vstv %s1271_s9 }
 0x1d9   : >> { %v943_v54 = vsel %vm941_vm8, %v942_v10, 0.0 }
 0x1df   : >> { %s1273_s10 = spop %1272 }
 0x1e0   : >> { %v945_v19 = vstv %s1273_s10  ;;  %s1275_s11 = spop %1274 }
 0x1e1   : >> { %v946_v21 = vsel %vm944_vm9, %v945_v19, 0.0  ;;  %v949_v23 = vstv %s1275_s11 }
 0x1e2   : >> { %v947_v24 = vadd.f32 %v946_v21, %v943_v54  ;;  %s1277_s12 = spop %1276  ;;  %v950_v25 = vsel %vm948_vm10, %v949_v23, 0.0 }
 0x1e3   : >> { %v953_v30 = vstv %s1277_s12  ;;  %s1279_s16 = spop %1278 }
 0x1e4   : >> { %v951_v33 = vadd.f32 %v950_v25, %v947_v24  ;;  %v957_v45 = vstv %s1279_s16  ;;  %s1281_s17 = spop %1280  ;;  %v954_v35 = vsel %vm952_vm11, %v953_v30, 0.0 }
 0x1e5   : >> { %v961_v37 = vstv %s1281_s17  ;;  %v958_v31 = vsel %vm956_vm12, %v957_v45, 0.0 }
 0x1e6   : >> { %v955_v36 = vadd.f32 %v954_v35, %v951_v33  ;;  %v962_v39 = vsel %vm960_vm13, %v961_v37, 0.0 }
 0x1e8   : >> { %v959_v38 = vadd.f32 %v958_v31, %v955_v36 }
 0x1ea   : >> { %v963_v40 = vadd.f32 %v962_v39, %v959_v38 }
 0x1eb   : > { %842 = sbr.rel (!%p839_p6) target bundleno = 279 (0x117), region = 119 }
 0x1ec   : >> { %v967_v42 = vsel %vm966_vm14, %v963_v40, 0.0 }
 0x1ed   : >> { %v968_v43 = vadd.f32 %v967_v42, %v964_v41 }
 0x1ef   : >> { %969 = vst [vmem:[%s1696_s18] sm:$0xff] %v968_v43 }
 0x1f0 PF: > { %s32_s15 = sadd.s32 1, %s1398_s15   ;;  %s1786_s13 = smov %s1394_s14 }
 0x1f1   : > { %p29_p7 = scmp.ge.s32.totalorder %s32_s15, 4   ;;  %s1787_s14 = smov %s1789_s0 }
 0x1f3   :  { %31 = sbr.rel (!%p29_p7) target bundleno = 9 (0x9), region = 130 }

// kernel: _forward.3
= control target key start
LH: loop header
LB: loop body
LE: loop exit
PB: predicated region body
PF: predicated region fallthrough
CT: control target
= control target key end

     0   :  { %s959_s30 = smov [#allocation3]   ;;  %s960_s8 = smov [#allocation4]   ;;  %s1436_s0 = inlined_call_operand.vmem [shape: s32[50], index: 0, kind: input, shape index: {}]   ;;  %s1437_s3 = inlined_call_operand.vmem [shape: f32[2,3,16,16], index: 3, kind: input, shape index: {}]   ;;  %s1438_s4 = inlined_call_operand.vmem [shape: s32[2,16,16], index: 4, kind: input, shape index: {}]   ;;  %s1439_s5 = inlined_call_operand.vmem [shape: bf16[2,25,16,16], index: 5, kind: output, shape index: {0}]   ;;  %s1440_s6 = inlined_call_operand.vmem [shape: bf16[2,25,16,16], index: 6, kind: output, shape index: {1}]   ;;  %s1441_s7 = inlined_call_operand.vmem [shape: f32[2,8,128], index: 7, kind: output, shape index: {2}]   ;;  %s1442_s1 = inlined_call_operand.vmem [shape: s32[2], index: 1, kind: input, shape index: {}]   ;;  %s1443_s2 = inlined_call_operand.vmem [shape: f32[200], index: 2, kind: input, shape index: {}]  }
   0x1   :  { %s14_s26 = sshll.u32 %s1436_s0, 4  ;;  %s19_s29 = sshll.u32 %s1442_s1, 4  ;;  %s15_s26 = int_to_ptr.vmem [resolvable:$true] %s14_s26  ;;  %s20_s29 = int_to_ptr.vmem [resolvable:$true] %s19_s29 }
   0x2   :  { %17 = dma.vmem_to_smem %s15_s26, 16, %s959_s30, [#allocation2] }
   0x3   :  { %22 = dma.vmem_to_smem %s20_s29, 16, %s960_s8, [#allocation2] }
   0x4   :  { %s24_s11 = sshll.u32 %s1443_s2, 4  ;;  %s961_s12 = smov [#allocation5]   ;;  %s25_s11 = int_to_ptr.vmem [resolvable:$true] %s24_s11 }
   0x5   :  { %27 = dma.vmem_to_smem %s25_s11, 32, %s961_s12, [#allocation2] }
   0x6   :  { %941 = dma.done.wait [#allocation2], 64 }
   0x7   :  { %942 = vsyncadd [#allocation2], 4294967232 }
   0x8   :  { %30 = sfence }
   0x9   :  { %s1014_s0 = smov 0   ;;  %s1016_s13 = smov 0  }
   0xa   :  { %s1018_s1 = smov 0  }
   0xb LB: > { %s55_s2 = sadd.s32 1, %s949_s13  ;;  %p820_p0 = scmp.ge.s32.totalorder %s953_s1, 1  ;;  %s953_s1 = sphi %s1018_s1, %s36_s1   ;;  %s949_s13 = sphi %s1016_s13, %s1445_s13   ;;  %s945_s0 = sphi %s1014_s0, %s1444_s0  }
   0xc   : > { %p57_p1 = scmp.ge.s32.totalorder %s55_s2, 2  ;;  %p249_p2 = scmp.lt.s32.totalorder %s953_s1, 3 }
   0xe   : > { %s1447_s2 = smov (%p57_p1, %s55_s2), 0  ;;  %p250_p3 = pnand %p820_p0, %p249_p2 }
   0xf   : > { %p318_p4 = scmp.lt.s32.totalorder (!%p250_p3), %s945_s0, 1  ;;  %s1036_s14 = sld [smem:[#allocation4 + %s945_s0]] (!%p250_p3) }
  0x10   : > { %253 = sbr.rel (%p250_p3) target bundleno = 353 (0x161), region = 28 }
  0x15   : > { %v388_v0 = vlaneseq  ;;  %s1039_s15 = scalar_select %p318_p4, %s945_s0, 1  ;;  %vm395_vm0 = vcmask 125952   ;;  %v962_v11 = vmov 0   ;;  %v963_v12 = vmov 0.0  }
  0x16   : > { %p831_p5 = scmp.le.s32.totalorder %s1036_s14, 0 }
  0x17   : > { %v1041_v1 = vshrl.u32 %v388_v0, 7  ;;  %v1043_v2 = vand.u32 127, %v388_v0  ;;  %s843_s16 = smul.u32 48, %s1039_s15  ;;  %s840_s17 = sshll.u32 %s1039_s15, 4 }
  0x18   : > { %s341_s20 = scalar_lea.vmem %s1438_s4, %s840_s17  ;;  %s844_s21 = smul.u32 200, %s1039_s15 }
  0x19   : > { %s328_s24 = scalar_lea.vmem %s1437_s3, %s843_s16  ;;  %s826_s25 = sshll.u32 %s1039_s15, 3  ;;  %v1055_v3 = vld [vmem:[%s341_s20] sm:$0xff]  ;;  %v1057_v4 = vld [vmem:[%s341_s20 + $0x8] sm:$0xff] }
  0x1a   : > { %s1064_s28 = scalar_lea.vmem %s1439_s5, %s844_s21  ;;  %v1066_v5 = vld [vmem:[%s328_s24] sm:$0xff]  ;;  %v1068_v6 = vld [vmem:[%s328_s24 + $0x8] sm:$0xff]  ;;  %v1070_v7 = vld [vmem:[%s328_s24 + $0x10] sm:$0xff]  ;;  %s1075_s8 = scalar_lea.vmem %s1441_s7, %s826_s25 }
  0x1b   : > { %v1077_v8 = vld [vmem:[%s328_s24 + $0x18] sm:$0xff]  ;;  %v1079_v9 = vld [vmem:[%s328_s24 + $0x20] sm:$0xff]  ;;  %v1081_v10 = vld [vmem:[%s328_s24 + $0x28] sm:$0xff]  ;;  %396 = vst.msk [vmem:[%s1064_s28] sm:$0xf] %vm395_vm0, %v962_v11  ;;  %s1230_s11 = scalar_lea.vmem %s1440_s6, %s844_s21  ;;  %s1392_s12 = smov (!%p831_p5), 0  }
  0x1c   : > { %394 = vst [vmem:[%s1075_s8] sm:$0xff] %v963_v12 }
  0x1d   : > { %397 = vst.msk [vmem:[%s1064_s28 + $0x4] sm:$0xf] %vm395_vm0, %v962_v11 }
  0x1e   : > { %398 = vst.msk [vmem:[%s1064_s28 + $0x8] sm:$0xf] %vm395_vm0, %v962_v11 }
  0x1f   : > { %399 = vst.msk [vmem:[%s1064_s28 + $0xc] sm:$0xf] %vm395_vm0, %v962_v11 }
  0x20   : > { %400 = vst.msk [vmem:[%s1064_s28 + $0x10] sm:$0xf] %vm395_vm0, %v962_v11 }
  0x21   : > { %401 = vst.msk [vmem:[%s1064_s28 + $0x14] sm:$0xf] %vm395_vm0, %v962_v11 }
  0x22   : > { %402 = vst.msk [vmem:[%s1064_s28 + $0x18] sm:$0xf] %vm395_vm0, %v962_v11 }
  0x23   : > { %403 = vst.msk [vmem:[%s1064_s28 + $0x1c] sm:$0xf] %vm395_vm0, %v962_v11 }
  0x24   : > { %404 = vst.msk [vmem:[%s1064_s28 + $0x20] sm:$0xf] %vm395_vm0, %v962_v11 }
  0x25   : > { %405 = vst.msk [vmem:[%s1064_s28 + $0x24] sm:$0xf] %vm395_vm0, %v962_v11 }
  0x26   : > { %406 = vst.msk [vmem:[%s1064_s28 + $0x28] sm:$0xf] %vm395_vm0, %v962_v11 }
  0x27   : > { %407 = vst.msk [vmem:[%s1064_s28 + $0x2c] sm:$0xf] %vm395_vm0, %v962_v11 }
  0x28   : > { %408 = vst.msk [vmem:[%s1064_s28 + $0x30] sm:$0xf] %vm395_vm0, %v962_v11 }
  0x29   : > { %409 = vst.msk [vmem:[%s1064_s28 + $0x34] sm:$0xf] %vm395_vm0, %v962_v11 }
  0x2a   : > { %410 = vst.msk [vmem:[%s1064_s28 + $0x38] sm:$0xf] %vm395_vm0, %v962_v11 }
  0x2b   : > { %411 = vst.msk [vmem:[%s1064_s28 + $0x3c] sm:$0xf] %vm395_vm0, %v962_v11 }
  0x2c   : > { %412 = vst.msk [vmem:[%s1064_s28 + $0x40] sm:$0xf] %vm395_vm0, %v962_v11 }
  0x2d   : > { %413 = vst.msk [vmem:[%s1064_s28 + $0x44] sm:$0xf] %vm395_vm0, %v962_v11 }
  0x2e   : > { %414 = vst.msk [vmem:[%s1064_s28 + $0x48] sm:$0xf] %vm395_vm0, %v962_v11 }
  0x2f   : > { %415 = vst.msk [vmem:[%s1064_s28 + $0x4c] sm:$0xf] %vm395_vm0, %v962_v11 }
  0x30   : > { %416 = vst.msk [vmem:[%s1064_s28 + $0x50] sm:$0xf] %vm395_vm0, %v962_v11 }
  0x31   : > { %417 = vst.msk [vmem:[%s1064_s28 + $0x54] sm:$0xf] %vm395_vm0, %v962_v11 }
  0x32   : > { %418 = vst.msk [vmem:[%s1064_s28 + $0x58] sm:$0xf] %vm395_vm0, %v962_v11 }
  0x33   : > { %419 = vst.msk [vmem:[%s1064_s28 + $0x5c] sm:$0xf] %vm395_vm0, %v962_v11 }
  0x34   : > { %420 = vst.msk [vmem:[%s1064_s28 + $0x60] sm:$0xf] %vm395_vm0, %v962_v11 }
  0x35   : > { %421 = vst.msk [vmem:[%s1064_s28 + $0x64] sm:$0xf] %vm395_vm0, %v962_v11 }
  0x36   : > { %422 = vst.msk [vmem:[%s1064_s28 + $0x68] sm:$0xf] %vm395_vm0, %v962_v11 }
  0x37   : > { %423 = vst.msk [vmem:[%s1064_s28 + $0x6c] sm:$0xf] %vm395_vm0, %v962_v11 }
  0x38   : > { %424 = vst.msk [vmem:[%s1064_s28 + $0x70] sm:$0xf] %vm395_vm0, %v962_v11 }
  0x39   : > { %425 = vst.msk [vmem:[%s1064_s28 + $0x74] sm:$0xf] %vm395_vm0, %v962_v11 }
  0x3a   : > { %426 = vst.msk [vmem:[%s1064_s28 + $0x78] sm:$0xf] %vm395_vm0, %v962_v11 }
  0x3b   : > { %427 = vst.msk [vmem:[%s1064_s28 + $0x7c] sm:$0xf] %vm395_vm0, %v962_v11 }
  0x3c   : > { %428 = vst.msk [vmem:[%s1064_s28 + $0x80] sm:$0xf] %vm395_vm0, %v962_v11 }
  0x3d   : > { %429 = vst.msk [vmem:[%s1064_s28 + $0x84] sm:$0xf] %vm395_vm0, %v962_v11 }
  0x3e   : > { %430 = vst.msk [vmem:[%s1064_s28 + $0x88] sm:$0xf] %vm395_vm0, %v962_v11 }
  0x3f   : > { %431 = vst.msk [vmem:[%s1064_s28 + $0x8c] sm:$0xf] %vm395_vm0, %v962_v11 }
  0x40   : > { %432 = vst.msk [vmem:[%s1064_s28 + $0x90] sm:$0xf] %vm395_vm0, %v962_v11 }
  0x41   : > { %433 = vst.msk [vmem:[%s1064_s28 + $0x94] sm:$0xf] %vm395_vm0, %v962_v11 }
  0x42   : > { %434 = vst.msk [vmem:[%s1064_s28 + $0x98] sm:$0xf] %vm395_vm0, %v962_v11 }
  0x43   : > { %435 = vst.msk [vmem:[%s1064_s28 + $0x9c] sm:$0xf] %vm395_vm0, %v962_v11 }
  0x44   : > { %436 = vst.msk [vmem:[%s1064_s28 + $0xa0] sm:$0xf] %vm395_vm0, %v962_v11 }
  0x45   : > { %437 = vst.msk [vmem:[%s1064_s28 + $0xa4] sm:$0xf] %vm395_vm0, %v962_v11 }
  0x46   : > { %438 = vst.msk [vmem:[%s1064_s28 + $0xa8] sm:$0xf] %vm395_vm0, %v962_v11 }
  0x47   : > { %439 = vst.msk [vmem:[%s1064_s28 + $0xac] sm:$0xf] %vm395_vm0, %v962_v11 }
  0x48   : > { %440 = vst.msk [vmem:[%s1064_s28 + $0xb0] sm:$0xf] %vm395_vm0, %v962_v11 }
  0x49   : > { %441 = vst.msk [vmem:[%s1064_s28 + $0xb4] sm:$0xf] %vm395_vm0, %v962_v11 }
  0x4a   : > { %442 = vst.msk [vmem:[%s1064_s28 + $0xb8] sm:$0xf] %vm395_vm0, %v962_v11 }
  0x4b   : > { %443 = vst.msk [vmem:[%s1064_s28 + $0xbc] sm:$0xf] %vm395_vm0, %v962_v11 }
  0x4c   : > { %444 = vst.msk [vmem:[%s1064_s28 + $0xc0] sm:$0xf] %vm395_vm0, %v962_v11 }
  0x4d   : > { %445 = vst.msk [vmem:[%s1064_s28 + $0xc4] sm:$0xf] %vm395_vm0, %v962_v11 }
  0x4e   : > { %446 = vst.msk [vmem:[%s1230_s11] sm:$0xf] %vm395_vm0, %v962_v11 }
  0x4f   : > { %447 = vst.msk [vmem:[%s1230_s11 + $0x4] sm:$0xf] %vm395_vm0, %v962_v11 }
  0x50   : > { %448 = vst.msk [vmem:[%s1230_s11 + $0x8] sm:$0xf] %vm395_vm0, %v962_v11 }
  0x51   : > { %449 = vst.msk [vmem:[%s1230_s11 + $0xc] sm:$0xf] %vm395_vm0, %v962_v11 }
  0x52   : > { %450 = vst.msk [vmem:[%s1230_s11 + $0x10] sm:$0xf] %vm395_vm0, %v962_v11 }
  0x53   : > { %451 = vst.msk [vmem:[%s1230_s11 + $0x14] sm:$0xf] %vm395_vm0, %v962_v11 }
  0x54   : > { %452 = vst.msk [vmem:[%s1230_s11 + $0x18] sm:$0xf] %vm395_vm0, %v962_v11 }
  0x55   : > { %453 = vst.msk [vmem:[%s1230_s11 + $0x1c] sm:$0xf] %vm395_vm0, %v962_v11 }
  0x56   : > { %454 = vst.msk [vmem:[%s1230_s11 + $0x20] sm:$0xf] %vm395_vm0, %v962_v11 }
  0x57   : > { %455 = vst.msk [vmem:[%s1230_s11 + $0x24] sm:$0xf] %vm395_vm0, %v962_v11 }
  0x58   : > { %456 = vst.msk [vmem:[%s1230_s11 + $0x28] sm:$0xf] %vm395_vm0, %v962_v11 }
  0x59   : > { %457 = vst.msk [vmem:[%s1230_s11 + $0x2c] sm:$0xf] %vm395_vm0, %v962_v11 }
  0x5a   : > { %458 = vst.msk [vmem:[%s1230_s11 + $0x30] sm:$0xf] %vm395_vm0, %v962_v11 }
  0x5b   : > { %459 = vst.msk [vmem:[%s1230_s11 + $0x34] sm:$0xf] %vm395_vm0, %v962_v11 }
  0x5c   : > { %460 = vst.msk [vmem:[%s1230_s11 + $0x38] sm:$0xf] %vm395_vm0, %v962_v11 }
  0x5d   : > { %461 = vst.msk [vmem:[%s1230_s11 + $0x3c] sm:$0xf] %vm395_vm0, %v962_v11 }
  0x5e   : > { %462 = vst.msk [vmem:[%s1230_s11 + $0x40] sm:$0xf] %vm395_vm0, %v962_v11 }
  0x5f   : > { %463 = vst.msk [vmem:[%s1230_s11 + $0x44] sm:$0xf] %vm395_vm0, %v962_v11 }
  0x60   : > { %464 = vst.msk [vmem:[%s1230_s11 + $0x48] sm:$0xf] %vm395_vm0, %v962_v11 }
  0x61   : > { %465 = vst.msk [vmem:[%s1230_s11 + $0x4c] sm:$0xf] %vm395_vm0, %v962_v11 }
  0x62   : > { %466 = vst.msk [vmem:[%s1230_s11 + $0x50] sm:$0xf] %vm395_vm0, %v962_v11 }
  0x63   : > { %467 = vst.msk [vmem:[%s1230_s11 + $0x54] sm:$0xf] %vm395_vm0, %v962_v11 }
  0x64   : > { %468 = vst.msk [vmem:[%s1230_s11 + $0x58] sm:$0xf] %vm395_vm0, %v962_v11 }
  0x65   : > { %469 = vst.msk [vmem:[%s1230_s11 + $0x5c] sm:$0xf] %vm395_vm0, %v962_v11 }
  0x66   : > { %470 = vst.msk [vmem:[%s1230_s11 + $0x60] sm:$0xf] %vm395_vm0, %v962_v11 }
  0x67   : > { %471 = vst.msk [vmem:[%s1230_s11 + $0x64] sm:$0xf] %vm395_vm0, %v962_v11 }
  0x68   : > { %472 = vst.msk [vmem:[%s1230_s11 + $0x68] sm:$0xf] %vm395_vm0, %v962_v11 }
  0x69   : > { %473 = vst.msk [vmem:[%s1230_s11 + $0x6c] sm:$0xf] %vm395_vm0, %v962_v11 }
  0x6a   : > { %474 = vst.msk [vmem:[%s1230_s11 + $0x70] sm:$0xf] %vm395_vm0, %v962_v11 }
  0x6b   : > { %475 = vst.msk [vmem:[%s1230_s11 + $0x74] sm:$0xf] %vm395_vm0, %v962_v11 }
  0x6c   : > { %476 = vst.msk [vmem:[%s1230_s11 + $0x78] sm:$0xf] %vm395_vm0, %v962_v11 }
  0x6d   : > { %477 = vst.msk [vmem:[%s1230_s11 + $0x7c] sm:$0xf] %vm395_vm0, %v962_v11 }
  0x6e   : > { %478 = vst.msk [vmem:[%s1230_s11 + $0x80] sm:$0xf] %vm395_vm0, %v962_v11 }
  0x6f   : > { %479 = vst.msk [vmem:[%s1230_s11 + $0x84] sm:$0xf] %vm395_vm0, %v962_v11 }
  0x70   : > { %480 = vst.msk [vmem:[%s1230_s11 + $0x88] sm:$0xf] %vm395_vm0, %v962_v11 }
  0x71   : > { %481 = vst.msk [vmem:[%s1230_s11 + $0x8c] sm:$0xf] %vm395_vm0, %v962_v11 }
  0x72   : > { %482 = vst.msk [vmem:[%s1230_s11 + $0x90] sm:$0xf] %vm395_vm0, %v962_v11 }
  0x73   : > { %483 = vst.msk [vmem:[%s1230_s11 + $0x94] sm:$0xf] %vm395_vm0, %v962_v11 }
  0x74   : > { %484 = vst.msk [vmem:[%s1230_s11 + $0x98] sm:$0xf] %vm395_vm0, %v962_v11 }
  0x75   : > { %485 = vst.msk [vmem:[%s1230_s11 + $0x9c] sm:$0xf] %vm395_vm0, %v962_v11 }
  0x76   : > { %486 = vst.msk [vmem:[%s1230_s11 + $0xa0] sm:$0xf] %vm395_vm0, %v962_v11 }
  0x77   : > { %487 = vst.msk [vmem:[%s1230_s11 + $0xa4] sm:$0xf] %vm395_vm0, %v962_v11 }
  0x78   : > { %488 = vst.msk [vmem:[%s1230_s11 + $0xa8] sm:$0xf] %vm395_vm0, %v962_v11 }
  0x79   : > { %489 = vst.msk [vmem:[%s1230_s11 + $0xac] sm:$0xf] %vm395_vm0, %v962_v11 }
  0x7a   : > { %490 = vst.msk [vmem:[%s1230_s11 + $0xb0] sm:$0xf] %vm395_vm0, %v962_v11 }
  0x7b   : > { %491 = vst.msk [vmem:[%s1230_s11 + $0xb4] sm:$0xf] %vm395_vm0, %v962_v11  ;;  %757 = sbr.rel (%p831_p5) target bundleno = 353 (0x161), region = 94 }
  0x7c   : > { %492 = vst.msk [vmem:[%s1230_s11 + $0xb8] sm:$0xf] %vm395_vm0, %v962_v11 }
  0x7d   : > { %493 = vst.msk [vmem:[%s1230_s11 + $0xbc] sm:$0xf] %vm395_vm0, %v962_v11 }
  0x7e   : > { %494 = vst.msk [vmem:[%s1230_s11 + $0xc0] sm:$0xf] %vm395_vm0, %v962_v11 }
  0x7f   : > { %495 = vst.msk [vmem:[%s1230_s11 + $0xc4] sm:$0xf] %vm395_vm0, %v962_v11 }
  0x80 LB: >> { %s503_s15 = smul.u32 25, %s945_s0  ;;  %s841_s26 = sshll.u32 %s957_s12, 3  ;;  %v964_v15 = vmov 0.0   ;;  %vm570_vm3 = vcmask 130048   ;;  %vm584_vm4 = vcmp.eq.s32.totalorder %v1041_v1, 0  ;;  %s957_s12 = sphi %s1392_s12, %s500_s12  }
  0x81   : >> { %s561_s27 = scalar_lea.vmem %s1230_s11, %s841_s26  ;;  %s555_s29 = scalar_lea.vmem %s1064_s28, %s841_s26 }
  0x82   : >> { %s504_s16 = sadd.s32 %s957_s12, %s503_s15 }
  0x83   : >> { %s505_s17 = sld [smem:[#allocation3 + %s504_s16]]  ;;  %s832_s18 = sshll.u32 %s504_s16, 2 }
  0x84   : >> { %s507_s19 = sld [smem:[#allocation5 + %s832_s18]]  ;;  %s508_s20 = sadd.s32 1, %s832_s18 }
  0x85   : >> { %s509_s21 = sld [smem:[#allocation5 + %s508_s20]]  ;;  %s510_s22 = sadd.s32 2, %s832_s18 }
  0x86   : >> { %s511_s23 = sld [smem:[#allocation5 + %s510_s22]]  ;;  %s512_s24 = sadd.s32 3, %s832_s18 }
  0x87   : >> { %s513_s25 = sld [smem:[#allocation5 + %s512_s24]] }
  0x89   : >> { %v514_v13 = vstv %s505_s17 }
  0x8a   : >> { %vm515_vm1 = vcmp.eq.s32.totalorder %v1055_v3, %v514_v13  ;;  %vm516_vm2 = vcmp.eq.s32.totalorder %v1057_v4, %v514_v13  ;;  %v521_v14 = vstv %s507_s19  ;;  %v585_v13 = vstv %s957_s12  ;;  %s500_s12 = sadd.s32 1, %s957_s12  }
  0x8b   : >> { %v833_v16 = vsel %vm515_vm1, 1.0, %v964_v15  ;;  %v834_v17 = vsel %vm516_vm2, 1.0, %v964_v15  ;;  %v522_v18 = vsub.f32 %v1066_v5, %v521_v14  ;;  %v523_v19 = vsub.f32 %v1068_v6, %v521_v14  ;;  %v583_v14 = vld [vmem:[%s1075_s8] sm:$0xff]  ;;  %p499_p6 = scmp.ge.s32.totalorder %s500_s12, %s1036_s14 }
  0x8c   : >> { %v526_v20 = vstv %s511_s23  ;;  %v529_v21 = vstv %s509_s21  ;;  %v558_v22 = vpack.c.bf16 %v833_v16, %v833_v16  ;;  %v559_v23 = vpack.c.bf16 %v834_v17, %v834_v17 }
  0x8d   : >> { %v524_v24 = vmul.f32 %v522_v18, %v522_v18  ;;  %v525_v25 = vmul.f32 %v523_v19, %v523_v19  ;;  %v530_v26 = vsub.f32 %v1070_v7, %v529_v21  ;;  %v531_v27 = vsub.f32 %v1077_v8, %v529_v21 }
  0x8e   : >> { %v534_v28 = vstv %s513_s25  ;;  %562 = vst.msk [vmem:[%s561_s27] sm:$0xf] %vm395_vm0, %v558_v22  ;;  %vm586_vm5 = vcmp.eq.s32.totalorder %v1043_v2, %v585_v13 }
  0x8f   : >> { %v527_v29 = vmul.f32 %v526_v20, %v524_v24  ;;  %v528_v30 = vmul.f32 %v526_v20, %v525_v25  ;;  %v532_v31 = vmul.f32 %v530_v26, %v530_v26  ;;  %v533_v32 = vmul.f32 %v531_v27, %v531_v27  ;;  %563 = vst.msk [vmem:[%s561_s27 + $0x4] sm:$0xf] %vm395_vm0, %v559_v23  ;;  %vm587_vm6 = vmand %vm584_vm4, %vm586_vm5 }
  0x91   : >> { %v535_v33 = vmul.f32 %v534_v28, %v532_v31  ;;  %v536_v34 = vmul.f32 %v534_v28, %v533_v32 }
  0x93   : >> { %v537_v35 = vadd.f32 %v535_v33, %v527_v29  ;;  %v538_v36 = vadd.f32 %v536_v34, %v528_v30 }
  0x95   : >> { %v539_v37 = vsub.f32 0.0, %v537_v35  ;;  %v540_v38 = vsub.f32 0.0, %v538_v36 }
  0x97   : >> { %v541_v39 = vmul.f32 1.442695, %v539_v37  ;;  %v543_v40 = vmul.f32 1.442695, %v540_v38 }
  0x99   : >> { %885 = vpow2.f32 %v541_v39 }
  0x9a   : >> { %887 = vpow2.f32 %v543_v40 }
  0x9f   : >> { %v886_v41 = vpop.eup %885 }
  0xa0   : >> { %v888_v42 = vpop.eup %887  ;;  %v545_v43 = vsub.f32 %v833_v16, %v886_v41  ;;  %v564_v44 = vsub.f32 %v1079_v9, %v886_v41 }
  0xa1   : >> { %v546_v45 = vsub.f32 %v834_v17, %v888_v42  ;;  %v565_v46 = vsub.f32 %v1081_v10, %v888_v42 }
  0xa2   : >> { %v547_v47 = vand.u32 2147483647, %v545_v43  ;;  %v566_v48 = vmul.f32 %v564_v44, %v564_v44 }
  0xa3   : >> { %v548_v49 = vand.u32 2147483647, %v546_v45  ;;  %v567_v50 = vmul.f32 %v565_v46, %v565_v46 }
  0xa4   : >> { %v549_v51 = vmul.f32 2.0, %v547_v47  ;;  %v568_v52 = vmul.f32 %v833_v16, %v566_v48 }
  0xa5   : >> { %v550_v53 = vmul.f32 2.0, %v548_v49  ;;  %v569_v54 = vmul.f32 %v834_v17, %v567_v50 }
  0xa6   : >> { %v551_v55 = vpack.c.bf16 %v549_v51, %v549_v51  ;;  %v571_v56 = vsel %vm570_vm3, %v568_v52, 0.0 }
  0xa7   : >> { %v552_v57 = vpack.c.bf16 %v550_v53, %v550_v53  ;;  %v572_v58 = vsel %vm570_vm3, %v569_v54, 0.0 }
  0xa8   : >> { %556 = vst.msk [vmem:[%s555_s29] sm:$0xf] %vm395_vm0, %v551_v55  ;;  %v573_v59 = vadd.f32 %v572_v58, %v571_v56 }
  0xa9   : >> { %557 = vst.msk [vmem:[%s555_s29 + $0x4] sm:$0xf] %vm395_vm0, %v552_v57 }
  0xaa   : >> { %574 = vadd.xlane.f32.xlu0 %v573_v59 }
 0x11d   : >> { %v575_v60 = vpop.xlane.xlu0 %574 }
 0x11e   : >> { %v576_v61 = vrot.slane %v575_v60, 4 }
 0x120   : >> { %v577_v62 = vadd.f32 %v576_v61, %v575_v60 }
 0x122   : >> { %v578_v63 = vrot.slane %v577_v62, 2 }
 0x124   : >> { %v579_v0 = vadd.f32 %v578_v63, %v577_v62 }
 0x126   : >> { %v580_v11 = vrot.slane %v579_v0, 1 }
 0x128   : >> { %v581_v12 = vadd.f32 %v580_v11, %v579_v0 }
 0x12a   : >> { %845 = vpush %v581_v12 }
 0x15b   : >> { %s846_s30 = spop %845 }
 0x15c   : >> { %v588_v15 = vstv %s846_s30  ;;  %502 = sbr.rel (!%p499_p6) target bundleno = 128 (0x80), region = 100 }
 0x15d   : >> { %v589_v16 = vsel %vm587_vm6, %v588_v15, 0.0 }
 0x15e   : >> { %v590_v17 = vadd.f32 %v589_v16, %v583_v14 }
 0x160   : >> { %591 = vst [vmem:[%s1075_s8] sm:$0xff] %v590_v17 }
 0x161 PF: > { %s36_s1 = sadd.s32 1, %s953_s1   ;;  %s1444_s0 = smov %s949_s13 }
 0x162   : > { %p33_p7 = scmp.ge.s32.totalorder %s36_s1, 4   ;;  %s1445_s13 = smov %s1447_s2 }
 0x164   :  { %35 = sbr.rel (!%p33_p7) target bundleno = 11 (0xb), region = 111 }

</bundles_post_ra>
